<compile_context>
chip_gen: v5e
topology: v5e:2x2
jax: 0.10.0
libtpu: 0.0.40
codegen_flags: <defaults>
</compile_context>

<pallas_src>
import functools

import jax
import jax.numpy as jnp
from jax.experimental import pallas as pl
from jax.experimental.pallas import tpu as pltpu


def _round_up(v, m):
    return (v + m - 1) // m * m


def _pad2(a, rows, cols):
    return jnp.pad(a, ((0, rows - a.shape[0]), (0, cols - a.shape[1])))


def _vmem_capacity_bytes():
    """Trace-time VMEM capacity query; conservative (v7x-sized) fallback."""
    try:
        return int(pltpu.get_tpu_info().vmem_capacity_bytes)
    except Exception:
        return 64 << 20


def _pick_tile(n_pad, cap, min_programs=1):
    """Largest multiple of 128 that divides n_pad, is <= cap, and leaves >= min_programs steps."""
    m = n_pad // 128
    best = 128
    for d in range(1, m + 1):
        if m % d:
            continue
        t = d * 128
        if t <= cap and (m // d) >= min_programs:
            best = max(best, t)
    return best


# ----------------------------------------------------------------- streaming kernel


def _sage_stream_kernel(a_ref, xw_ref, sb_ref, invd_ref, o_ref, acc_ref, *, apply_relu):
    """Aggregation for one SAGE layer; epilogue matmuls hoisted out of the kernel.

    grid = (row tiles i, reduction tiles k over A's columns)
      a_ref   : (TM, TK) int8   neighbour-count block (unnormalized adjacency)
      xw_ref  : (TK, Fo)        (x @ Wl_folded) rows for this K tile (compute dtype)
      sb_ref  : (TM, Fo) f32    self term x @ Wr_folded + bias (resident across K)
      invd_ref: (TM, 1)  f32    1 / max(deg, 1) per row
      o_ref   : (TM, Fo)        output block (resident across K)
      acc_ref : (TM, Fo) f32    VMEM accumulator
    """
    k = pl.program_id(1)

    @pl.when(k == 0)
    def _():
        acc_ref[...] = jnp.zeros_like(acc_ref)

    # int8 -> MXU dtype (VPU cast, hidden under the A DMA on a memory-bound kernel).
    a = a_ref[...].astype(jnp.float32).astype(xw_ref.dtype)
    acc_ref[...] += jnp.dot(a, xw_ref[...], preferred_element_type=jnp.float32)

    @pl.when(k == pl.num_programs(1) - 1)
    def _():
        h = acc_ref[...] * invd_ref[...] + sb_ref[...]
        if apply_relu:
            h = jnp.maximum(h, 0.0)
        o_ref[...] = h.astype(o_ref.dtype)


def sage_layer_stream(a_i8, xw, sb, invd, *, apply_relu, out_dtype, tile_m, tile_k):
    """One SAGEConv('mean') + folded-BN (+ ReLU) layer, tiled over (row tiles, K tiles)."""
    n_pad = a_i8.shape[0]
    f_out = xw.shape[1]
    grid = (n_pad // tile_m, n_pad // tile_k)

    flops = 2 * n_pad * n_pad * f_out
    bytes_accessed = (a_i8.size * a_i8.dtype.itemsize
                      + grid[0] * xw.size * xw.dtype.itemsize     # xw re-streamed per row tile
                      + sb.size * 4 + invd.size * 4
                      + n_pad * f_out * jnp.dtype(out_dtype).itemsize)

    return pl.pallas_call(
        functools.partial(_sage_stream_kernel, apply_relu=apply_relu),
        out_shape=jax.ShapeDtypeStruct((n_pad, f_out), out_dtype),
        grid_spec=pltpu.PrefetchScalarGridSpec(
            num_scalar_prefetch=0,
            grid=grid,
            in_specs=[
                pl.BlockSpec((tile_m, tile_k), lambda i, k: (i, k)),   # A counts (int8)
                pl.BlockSpec((tile_k, f_out), lambda i, k: (k, 0)),    # x @ Wl rows
                pl.BlockSpec((tile_m, f_out), lambda i, k: (i, 0)),    # self term + bias
                pl.BlockSpec((tile_m, 1), lambda i, k: (i, 0)),        # 1 / deg
            ],
            out_specs=pl.BlockSpec((tile_m, f_out), lambda i, k: (i, 0)),
            scratch_shapes=[pltpu.VMEM((tile_m, f_out), jnp.float32)],
        ),
        compiler_params=pltpu.CompilerParams(
            dimension_semantics=("parallel", "arbitrary")),
        cost_estimate=pl.CostEstimate(flops=flops, transcendentals=0,
                                      bytes_accessed=bytes_accessed),
    )(a_i8, xw, sb, invd)


# ----------------------------------------------------------------- fused (A-resident) kernel


def _sage_fused_kernel(a_ref, x_ref, invd_ref, wl_ref, wr_ref, b_ref, o_ref, *, n_layers):
    """All layers fused, adjacency kept resident in VMEM (small/medium graphs).

      a_ref   : (Np, Np)       0/1(+multiplicity) adjacency counts (compute dtype, exact)
      x_ref   : (Np, F)        input features (padded to 128)
      invd_ref: (Np, 1)  f32   1 / max(deg, 1)
      wl_ref  : (L, F, F)      BN-folded Wl (stacked over layers)
      wr_ref  : (L, F, F)      BN-folded Wr
      b_ref   : (L, 1, F) f32  BN-folded bias
      o_ref   : (Np, F)  f32   final layer output
    """
    a = a_ref[...]
    invd = invd_ref[...]
    h = x_ref[...]
    for l in range(n_layers):
        agg = jnp.dot(a, h, preferred_element_type=jnp.float32) * invd
        z = jnp.dot(agg.astype(h.dtype), wl_ref[l], preferred_element_type=jnp.float32)
        z = z + jnp.dot(h, wr_ref[l], preferred_element_type=jnp.float32)
        z = z + b_ref[l]
        if l < n_layers - 1:
            h = jnp.maximum(z, 0.0).astype(h.dtype)
        else:
            o_ref[...] = z.astype(o_ref.dtype)


def sage_fused(a, x, invd, wl_s, wr_s, b_s, *, vmem_limit_bytes):
    n_pad, f_max = x.shape
    n_layers = wl_s.shape[0]

    flops = n_layers * (2 * n_pad * n_pad * f_max + 4 * n_pad * f_max * f_max)
    bytes_accessed = (a.size * a.dtype.itemsize + x.size * x.dtype.itemsize
                      + invd.size * 4
                      + (wl_s.size + wr_s.size) * wl_s.dtype.itemsize + b_s.size * 4
                      + n_pad * f_max * 4)

    return pl.pallas_call(
        functools.partial(_sage_fused_kernel, n_layers=n_layers),
        out_shape=jax.ShapeDtypeStruct((n_pad, f_max), jnp.float32),
        grid_spec=pltpu.PrefetchScalarGridSpec(
            num_scalar_prefetch=0,
            grid=(1,),
            in_specs=[
                pl.BlockSpec((n_pad, n_pad), lambda i: (0, 0)),
                pl.BlockSpec((n_pad, f_max), lambda i: (0, 0)),
                pl.BlockSpec((n_pad, 1), lambda i: (0, 0)),
                pl.BlockSpec(wl_s.shape, lambda i: (0, 0, 0)),
                pl.BlockSpec(wr_s.shape, lambda i: (0, 0, 0)),
                pl.BlockSpec(b_s.shape, lambda i: (0, 0, 0)),
            ],
            out_specs=pl.BlockSpec((n_pad, f_max), lambda i: (0, 0)),
        ),
        compiler_params=pltpu.CompilerParams(
            dimension_semantics=("arbitrary",),
            vmem_limit_bytes=vmem_limit_bytes),
        cost_estimate=pl.CostEstimate(flops=flops, transcendentals=0,
                                      bytes_accessed=bytes_accessed),
    )(a, x, invd, wl_s, wr_s, b_s)


# ----------------------------------------------------------------- host glue


def fold_batchnorm(params, eps=1e-5):
    """Fold eval-mode BatchNorm1d into the SAGEConv weights and bias."""
    wl, bl, wr, gamma, beta, rmean, rvar = params
    s = gamma / jnp.sqrt(rvar + eps)
    return wl * s, wr * s, bl * s + (beta - rmean * s)


def init_sage_layer(key, f_in, f_out):
    """Deterministic init matching SAGEConv (lin_l has bias, lin_r no bias) + BatchNorm."""
    k1, k2, k3 = jax.random.split(key, 3)
    bound = 1.0 / jnp.sqrt(jnp.float32(f_in))
    wl = jax.random.uniform(k1, (f_in, f_out), jnp.float32, -bound, bound)
    bl = jax.random.uniform(k2, (1, f_out), jnp.float32, -bound, bound)
    wr = jax.random.uniform(k3, (f_in, f_out), jnp.float32, -bound, bound)
    gamma = jnp.ones((1, f_out), jnp.float32)
    beta = jnp.zeros((1, f_out), jnp.float32)
    rmean = jnp.zeros((1, f_out), jnp.float32)
    rvar = jnp.ones((1, f_out), jnp.float32)
    return (wl, bl, wr, gamma, beta, rmean, rvar)


def sage_regression2_forward(x, edge_index, all_params, *,
                             compute_dtype=jnp.bfloat16, eps=1e-5,
                             fused_a_bytes_cap=8 << 20,
                             tile_m_cap=None, tile_k_cap=None):
    n, in_feats = x.shape
    out_feats = all_params[-1][0].shape[1]
    n_pad = _round_up(n, 128)                   # pad N only to the lane granule, not the tile

    # Mean aggregation pieces: integer neighbour counts + exact f32 per-row 1/deg.
    src, dst = edge_index[0], edge_index[1]
    counts = jnp.zeros((n, n), jnp.float32).at[dst, src].add(1.0)
    deg = counts.sum(axis=1, keepdims=True)
    invd_p = _pad2(1.0 / jnp.maximum(deg, 1.0), n_pad, 1)
    counts_p = _pad2(counts, n_pad, n_pad)

    # Fold eval-mode BatchNorm into each layer; pad feature dims to lane-dense 128 slabs.
    folded = []
    for params in all_params:
        wl_f, wr_f, b_f = fold_batchnorm(params, eps)
        fi_p, fo_p = _round_up(wl_f.shape[0], 128), _round_up(wl_f.shape[1], 128)
        folded.append((_pad2(wl_f, fi_p, fo_p), _pad2(wr_f, fi_p, fo_p), _pad2(b_f, 1, fo_p)))
    n_layers = len(folded)

    dtype_bytes = jnp.dtype(compute_dtype).itemsize
    big_vmem = _vmem_capacity_bytes() >= (96 << 20)      # v5e/v6e: 128 MiB; v7x: 64 MiB

    # ---- fused path: A resident in VMEM, all layers in one kernel (4x less A traffic) ----
    if n_pad * n_pad * dtype_bytes <= fused_a_bytes_cap:
        f_max = max(max(wl.shape) for wl, _, _ in folded)
        wl_s = jnp.stack([_pad2(wl, f_max, f_max) for wl, _, _ in folded]).astype(compute_dtype)
        wr_s = jnp.stack([_pad2(wr, f_max, f_max) for _, wr, _ in folded]).astype(compute_dtype)
        b_s = jnp.stack([_pad2(b, 1, f_max) for _, _, b in folded])        # f32
        a_p = counts_p.astype(compute_dtype)             # small-integer counts: exact in bf16
        x_p = _pad2(x, n_pad, f_max).astype(compute_dtype)
        out = sage_fused(a_p, x_p, invd_p, wl_s, wr_s, b_s,
                         vmem_limit_bytes=(48 << 20) if big_vmem else None)
        return out[:n, :out_feats]

    # ---- streaming path: int8 A, (row, K) grid, per-layer epilogue hoisted to XLA ----
    a_i8 = counts_p.astype(jnp.int8)    # TODO(synk): assumes edge multiplicity < 128
    tm_cap = tile_m_cap if tile_m_cap is not None else 1024
    tk_cap = tile_k_cap if tile_k_cap is not None else (4096 if big_vmem else 2048)
    tile_m = _pick_tile(n_pad, tm_cap, min_programs=2 if n_pad >= 256 else 1)  # v7x megacore
    tile_k = _pick_tile(n_pad, tk_cap)

    h = _pad2(x, n_pad, folded[0][0].shape[0]).astype(compute_dtype)
    for li, (wl_p, wr_p, b_p) in enumerate(folded):
        last = li == n_layers - 1
        # Tiny (N x 128) matmuls run by XLA between the long pallas_calls.
        xw = jnp.dot(h, wl_p.astype(compute_dtype),
                     preferred_element_type=jnp.float32).astype(compute_dtype)
        sb = jnp.dot(h, wr_p.astype(compute_dtype),
                     preferred_element_type=jnp.float32) + b_p
        h = sage_layer_stream(a_i8, xw, sb, invd_p,
                              apply_relu=not last,
                              out_dtype=jnp.float32 if last else compute_dtype,
                              tile_m=tile_m, tile_k=tile_k)
    return h[:n, :out_feats]


def _reference_forward(x, edge_index, all_params, eps=1e-5):
    """Pure-JAX f32 reference (unfolded BatchNorm)."""
    n = x.shape[0]
    src, dst = edge_index[0], edge_index[1]
    counts = jnp.zeros((n, n), jnp.float32).at[dst, src].add(1.0)
    a = counts / jnp.maximum(counts.sum(axis=1, keepdims=True), 1.0)
    h = x
    for i, (wl, bl, wr, gamma, beta, rmean, rvar) in enumerate(all_params):
        out = (a @ h) @ wl + bl + h @ wr
        out = (out - rmean) / jnp.sqrt(rvar + eps) * gamma + beta
        if i < len(all_params) - 1:
            out = jnp.maximum(out, 0.0)
        h = out
    return h


if __name__ == "__main__":
    IN_FEATS, HID_FEATS, OUT_FEATS = 8, 32, 4
    key = jax.random.PRNGKey(0)
    kp, k1, k2, k3, k4 = jax.random.split(key, 5)

    layer_dims = [(IN_FEATS, HID_FEATS), (HID_FEATS, HID_FEATS),
                  (HID_FEATS, HID_FEATS), (HID_FEATS, OUT_FEATS)]
    layer_keys = jax.random.split(kp, 4)
    all_params = [init_sage_layer(lk, fi, fo)
                  for lk, (fi, fo) in zip(layer_keys, layer_dims)]

    # ---- case 1: small graph -> fused (A-resident) kernel path ----
    N1, E1 = 16, 40
    x1 = jax.random.normal(k1, (N1, IN_FEATS), jnp.float32)
    ei1 = jax.random.randint(k2, (2, E1), 0, N1, jnp.int32)

    fwd_fused_bf16 = jax.jit(functools.partial(sage_regression2_forward,
                                               compute_dtype=jnp.bfloat16))
    fwd_fused_f32 = jax.jit(functools.partial(sage_regression2_forward,
                                              compute_dtype=jnp.float32))
    out1_bf16 = jax.block_until_ready(fwd_fused_bf16(x1, ei1, all_params))
    out1_f32 = jax.block_until_ready(fwd_fused_f32(x1, ei1, all_params))
    ref1 = _reference_forward(x1, ei1, all_params)
    assert out1_bf16.shape == (N1, OUT_FEATS)
    assert jnp.allclose(out1_f32, ref1, atol=2e-3, rtol=2e-3)
    assert jnp.allclose(out1_bf16, ref1, atol=1e-1, rtol=1e-1)

    # ---- case 2: force the streaming (tiled row/K grid) kernel path with small tiles ----
    N2, E2 = 300, 1200
    x2 = jax.random.normal(k3, (N2, IN_FEATS), jnp.float32)
    ei2 = jax.random.randint(k4, (2, E2), 0, N2, jnp.int32)

    fwd_stream_bf16 = jax.jit(functools.partial(
        sage_regression2_forward, compute_dtype=jnp.bfloat16,
        fused_a_bytes_cap=0, tile_m_cap=128, tile_k_cap=128))
    fwd_stream_f32 = jax.jit(functools.partial(
        sage_regression2_forward, compute_dtype=jnp.float32,
        fused_a_bytes_cap=0, tile_m_cap=128, tile_k_cap=128))
    out2_bf16 = jax.block_until_ready(fwd_stream_bf16(x2, ei2, all_params))
    out2_f32 = jax.block_until_ready(fwd_stream_f32(x2, ei2, all_params))
    ref2 = _reference_forward(x2, ei2, all_params)
    assert out2_bf16.shape == (N2, OUT_FEATS)
    assert jnp.allclose(out2_f32, ref2, atol=2e-3, rtol=2e-3)
    assert jnp.allclose(out2_bf16, ref2, atol=1e-1, rtol=1e-1)

    print("KERNEL_OK")
</pallas_src>

<mosaic_0001>
module attributes {stable_mosaic.version = 11 : i64} {
  func.func @_sage_fused_kernel(%arg0: i32, %arg1: memref<128x128xbf16, #tpu.memory_space<vmem>>, %arg2: memref<128x128xbf16, #tpu.memory_space<vmem>>, %arg3: memref<128x1xf32, #tpu.memory_space<vmem>>, %arg4: memref<4x128x128xbf16, #tpu.memory_space<vmem>>, %arg5: memref<4x128x128xbf16, #tpu.memory_space<vmem>>, %arg6: memref<4x1x128xf32, #tpu.memory_space<vmem>>, %arg7: memref<128x128xf32, #tpu.memory_space<vmem>>) attributes {dimension_semantics = [#tpu.dimension_semantics<arbitrary>], iteration_bounds = array<i64: 1>, scalar_prefetch = 0 : i64, scratch_operands = 0 : i64, tpu.core_type = #tpu.core_type<tc>, window_params = [{pipeline_mode = #tpu.pipeline_mode<synchronous>, transform_indices = @transform_0, window_bounds = array<i64: 128, 128>}, {pipeline_mode = #tpu.pipeline_mode<synchronous>, transform_indices = @transform_1, window_bounds = array<i64: 128, 128>}, {pipeline_mode = #tpu.pipeline_mode<synchronous>, transform_indices = @transform_2, window_bounds = array<i64: 128, 1>}, {pipeline_mode = #tpu.pipeline_mode<synchronous>, transform_indices = @transform_3, window_bounds = array<i64: 4, 128, 128>}, {pipeline_mode = #tpu.pipeline_mode<synchronous>, transform_indices = @transform_4, window_bounds = array<i64: 4, 128, 128>}, {pipeline_mode = #tpu.pipeline_mode<synchronous>, transform_indices = @transform_5, window_bounds = array<i64: 4, 1, 128>}, {pipeline_mode = #tpu.pipeline_mode<synchronous>, transform_indices = @transform_6, window_bounds = array<i64: 128, 128>}]} {
    %c0 = arith.constant 0 : index
    %c0_0 = arith.constant 0 : index
    %0 = vector.load %arg1[%c0, %c0_0] : memref<128x128xbf16, #tpu.memory_space<vmem>>, vector<128x128xbf16>
    %c0_1 = arith.constant 0 : index
    %c0_2 = arith.constant 0 : index
    %1 = vector.load %arg3[%c0_1, %c0_2] : memref<128x1xf32, #tpu.memory_space<vmem>>, vector<128x1xf32>
    %c0_3 = arith.constant 0 : index
    %c0_4 = arith.constant 0 : index
    %2 = vector.load %arg2[%c0_3, %c0_4] : memref<128x128xbf16, #tpu.memory_space<vmem>>, vector<128x128xbf16>
    %cst = arith.constant dense<0.000000e+00> : vector<128x128xf32>
    %3 = tpu.matmul %0, %2, %cst {dimension_numbers = #tpu.dot_dimension_numbers<[1], [0], [0], [1], [0, 0, 1, 1], [], []>} : vector<128x128xbf16>, vector<128x128xbf16>, vector<128x128xf32> -> vector<128x128xf32>
    %4 = vector.broadcast %1 : vector<128x1xf32> to vector<128x128xf32>
    %5 = arith.mulf %3, %4 : vector<128x128xf32>
    %6 = arith.truncf %5 : vector<128x128xf32> to vector<128x128xbf16>
    %c0_5 = arith.constant 0 : index
    %c0_6 = arith.constant 0 : index
    %c0_7 = arith.constant 0 : index
    %7 = vector.load %arg4[%c0_5, %c0_6, %c0_7] : memref<4x128x128xbf16, #tpu.memory_space<vmem>>, vector<1x128x128xbf16>
    %8 = vector.shape_cast %7 : vector<1x128x128xbf16> to vector<128x128xbf16>
    %cst_8 = arith.constant dense<0.000000e+00> : vector<128x128xf32>
    %9 = tpu.matmul %6, %8, %cst_8 {dimension_numbers = #tpu.dot_dimension_numbers<[1], [0], [0], [1], [0, 0, 1, 1], [], []>} : vector<128x128xbf16>, vector<128x128xbf16>, vector<128x128xf32> -> vector<128x128xf32>
    %c0_9 = arith.constant 0 : index
    %c0_10 = arith.constant 0 : index
    %c0_11 = arith.constant 0 : index
    %10 = vector.load %arg5[%c0_9, %c0_10, %c0_11] : memref<4x128x128xbf16, #tpu.memory_space<vmem>>, vector<1x128x128xbf16>
    %11 = vector.shape_cast %10 : vector<1x128x128xbf16> to vector<128x128xbf16>
    %cst_12 = arith.constant dense<0.000000e+00> : vector<128x128xf32>
    %12 = tpu.matmul %2, %11, %cst_12 {dimension_numbers = #tpu.dot_dimension_numbers<[1], [0], [0], [1], [0, 0, 1, 1], [], []>} : vector<128x128xbf16>, vector<128x128xbf16>, vector<128x128xf32> -> vector<128x128xf32>
    %13 = arith.addf %9, %12 : vector<128x128xf32>
    %c0_13 = arith.constant 0 : index
    %c0_14 = arith.constant 0 : index
    %c0_15 = arith.constant 0 : index
    %14 = vector.load %arg6[%c0_13, %c0_14, %c0_15] : memref<4x1x128xf32, #tpu.memory_space<vmem>>, vector<1x1x128xf32>
    %15 = vector.shape_cast %14 : vector<1x1x128xf32> to vector<1x128xf32>
    %16 = vector.broadcast %15 : vector<1x128xf32> to vector<128x128xf32>
    %17 = arith.addf %13, %16 : vector<128x128xf32>
    %cst_16 = arith.constant 0.000000e+00 : f32
    %18 = vector.broadcast %cst_16 : f32 to vector<128x128xf32>
    %19 = arith.maximumf %17, %18 : vector<128x128xf32>
    %20 = arith.truncf %19 : vector<128x128xf32> to vector<128x128xbf16>
    %cst_17 = arith.constant dense<0.000000e+00> : vector<128x128xf32>
    %21 = tpu.matmul %0, %20, %cst_17 {dimension_numbers = #tpu.dot_dimension_numbers<[1], [0], [0], [1], [0, 0, 1, 1], [], []>} : vector<128x128xbf16>, vector<128x128xbf16>, vector<128x128xf32> -> vector<128x128xf32>
    %22 = vector.broadcast %1 : vector<128x1xf32> to vector<128x128xf32>
    %23 = arith.mulf %21, %22 : vector<128x128xf32>
    %24 = arith.truncf %23 : vector<128x128xf32> to vector<128x128xbf16>
    %c1 = arith.constant 1 : index
    %c0_18 = arith.constant 0 : index
    %c0_19 = arith.constant 0 : index
    %25 = vector.load %arg4[%c1, %c0_18, %c0_19] : memref<4x128x128xbf16, #tpu.memory_space<vmem>>, vector<1x128x128xbf16>
    %26 = vector.shape_cast %25 : vector<1x128x128xbf16> to vector<128x128xbf16>
    %cst_20 = arith.constant dense<0.000000e+00> : vector<128x128xf32>
    %27 = tpu.matmul %24, %26, %cst_20 {dimension_numbers = #tpu.dot_dimension_numbers<[1], [0], [0], [1], [0, 0, 1, 1], [], []>} : vector<128x128xbf16>, vector<128x128xbf16>, vector<128x128xf32> -> vector<128x128xf32>
    %c1_21 = arith.constant 1 : index
    %c0_22 = arith.constant 0 : index
    %c0_23 = arith.constant 0 : index
    %28 = vector.load %arg5[%c1_21, %c0_22, %c0_23] : memref<4x128x128xbf16, #tpu.memory_space<vmem>>, vector<1x128x128xbf16>
    %29 = vector.shape_cast %28 : vector<1x128x128xbf16> to vector<128x128xbf16>
    %cst_24 = arith.constant dense<0.000000e+00> : vector<128x128xf32>
    %30 = tpu.matmul %20, %29, %cst_24 {dimension_numbers = #tpu.dot_dimension_numbers<[1], [0], [0], [1], [0, 0, 1, 1], [], []>} : vector<128x128xbf16>, vector<128x128xbf16>, vector<128x128xf32> -> vector<128x128xf32>
    %31 = arith.addf %27, %30 : vector<128x128xf32>
    %c1_25 = arith.constant 1 : index
    %c0_26 = arith.constant 0 : index
    %c0_27 = arith.constant 0 : index
    %32 = vector.load %arg6[%c1_25, %c0_26, %c0_27] : memref<4x1x128xf32, #tpu.memory_space<vmem>>, vector<1x1x128xf32>
    %33 = vector.shape_cast %32 : vector<1x1x128xf32> to vector<1x128xf32>
    %34 = vector.broadcast %33 : vector<1x128xf32> to vector<128x128xf32>
    %35 = arith.addf %31, %34 : vector<128x128xf32>
    %cst_28 = arith.constant 0.000000e+00 : f32
    %36 = vector.broadcast %cst_28 : f32 to vector<128x128xf32>
    %37 = arith.maximumf %35, %36 : vector<128x128xf32>
    %38 = arith.truncf %37 : vector<128x128xf32> to vector<128x128xbf16>
    %cst_29 = arith.constant dense<0.000000e+00> : vector<128x128xf32>
    %39 = tpu.matmul %0, %38, %cst_29 {dimension_numbers = #tpu.dot_dimension_numbers<[1], [0], [0], [1], [0, 0, 1, 1], [], []>} : vector<128x128xbf16>, vector<128x128xbf16>, vector<128x128xf32> -> vector<128x128xf32>
    %40 = vector.broadcast %1 : vector<128x1xf32> to vector<128x128xf32>
    %41 = arith.mulf %39, %40 : vector<128x128xf32>
    %42 = arith.truncf %41 : vector<128x128xf32> to vector<128x128xbf16>
    %c2 = arith.constant 2 : index
    %c0_30 = arith.constant 0 : index
    %c0_31 = arith.constant 0 : index
    %43 = vector.load %arg4[%c2, %c0_30, %c0_31] : memref<4x128x128xbf16, #tpu.memory_space<vmem>>, vector<1x128x128xbf16>
    %44 = vector.shape_cast %43 : vector<1x128x128xbf16> to vector<128x128xbf16>
    %cst_32 = arith.constant dense<0.000000e+00> : vector<128x128xf32>
    %45 = tpu.matmul %42, %44, %cst_32 {dimension_numbers = #tpu.dot_dimension_numbers<[1], [0], [0], [1], [0, 0, 1, 1], [], []>} : vector<128x128xbf16>, vector<128x128xbf16>, vector<128x128xf32> -> vector<128x128xf32>
    %c2_33 = arith.constant 2 : index
    %c0_34 = arith.constant 0 : index
    %c0_35 = arith.constant 0 : index
    %46 = vector.load %arg5[%c2_33, %c0_34, %c0_35] : memref<4x128x128xbf16, #tpu.memory_space<vmem>>, vector<1x128x128xbf16>
    %47 = vector.shape_cast %46 : vector<1x128x128xbf16> to vector<128x128xbf16>
    %cst_36 = arith.constant dense<0.000000e+00> : vector<128x128xf32>
    %48 = tpu.matmul %38, %47, %cst_36 {dimension_numbers = #tpu.dot_dimension_numbers<[1], [0], [0], [1], [0, 0, 1, 1], [], []>} : vector<128x128xbf16>, vector<128x128xbf16>, vector<128x128xf32> -> vector<128x128xf32>
    %49 = arith.addf %45, %48 : vector<128x128xf32>
    %c2_37 = arith.constant 2 : index
    %c0_38 = arith.constant 0 : index
    %c0_39 = arith.constant 0 : index
    %50 = vector.load %arg6[%c2_37, %c0_38, %c0_39] : memref<4x1x128xf32, #tpu.memory_space<vmem>>, vector<1x1x128xf32>
    %51 = vector.shape_cast %50 : vector<1x1x128xf32> to vector<1x128xf32>
    %52 = vector.broadcast %51 : vector<1x128xf32> to vector<128x128xf32>
    %53 = arith.addf %49, %52 : vector<128x128xf32>
    %cst_40 = arith.constant 0.000000e+00 : f32
    %54 = vector.broadcast %cst_40 : f32 to vector<128x128xf32>
    %55 = arith.maximumf %53, %54 : vector<128x128xf32>
    %56 = arith.truncf %55 : vector<128x128xf32> to vector<128x128xbf16>
    %cst_41 = arith.constant dense<0.000000e+00> : vector<128x128xf32>
    %57 = tpu.matmul %0, %56, %cst_41 {dimension_numbers = #tpu.dot_dimension_numbers<[1], [0], [0], [1], [0, 0, 1, 1], [], []>} : vector<128x128xbf16>, vector<128x128xbf16>, vector<128x128xf32> -> vector<128x128xf32>
    %58 = vector.broadcast %1 : vector<128x1xf32> to vector<128x128xf32>
    %59 = arith.mulf %57, %58 : vector<128x128xf32>
    %60 = arith.truncf %59 : vector<128x128xf32> to vector<128x128xbf16>
    %c3 = arith.constant 3 : index
    %c0_42 = arith.constant 0 : index
    %c0_43 = arith.constant 0 : index
    %61 = vector.load %arg4[%c3, %c0_42, %c0_43] : memref<4x128x128xbf16, #tpu.memory_space<vmem>>, vector<1x128x128xbf16>
    %62 = vector.shape_cast %61 : vector<1x128x128xbf16> to vector<128x128xbf16>
    %cst_44 = arith.constant dense<0.000000e+00> : vector<128x128xf32>
    %63 = tpu.matmul %60, %62, %cst_44 {dimension_numbers = #tpu.dot_dimension_numbers<[1], [0], [0], [1], [0, 0, 1, 1], [], []>} : vector<128x128xbf16>, vector<128x128xbf16>, vector<128x128xf32> -> vector<128x128xf32>
    %c3_45 = arith.constant 3 : index
    %c0_46 = arith.constant 0 : index
    %c0_47 = arith.constant 0 : index
    %64 = vector.load %arg5[%c3_45, %c0_46, %c0_47] : memref<4x128x128xbf16, #tpu.memory_space<vmem>>, vector<1x128x128xbf16>
    %65 = vector.shape_cast %64 : vector<1x128x128xbf16> to vector<128x128xbf16>
    %cst_48 = arith.constant dense<0.000000e+00> : vector<128x128xf32>
    %66 = tpu.matmul %56, %65, %cst_48 {dimension_numbers = #tpu.dot_dimension_numbers<[1], [0], [0], [1], [0, 0, 1, 1], [], []>} : vector<128x128xbf16>, vector<128x128xbf16>, vector<128x128xf32> -> vector<128x128xf32>
    %67 = arith.addf %63, %66 : vector<128x128xf32>
    %c3_49 = arith.constant 3 : index
    %c0_50 = arith.constant 0 : index
    %c0_51 = arith.constant 0 : index
    %68 = vector.load %arg6[%c3_49, %c0_50, %c0_51] : memref<4x1x128xf32, #tpu.memory_space<vmem>>, vector<1x1x128xf32>
    %69 = vector.shape_cast %68 : vector<1x1x128xf32> to vector<1x128xf32>
    %70 = vector.broadcast %69 : vector<1x128xf32> to vector<128x128xf32>
    %71 = arith.addf %67, %70 : vector<128x128xf32>
    %c0_52 = arith.constant 0 : index
    %c0_53 = arith.constant 0 : index
    %72 = vector.load %arg7[%c0_52, %c0_53] : memref<128x128xf32, #tpu.memory_space<vmem>>, vector<128x128xf32>
    tpu.vector_store %arg7[%c0_52, %c0_53], %71 {strides = array<i32>} : memref<128x128xf32, #tpu.memory_space<vmem>>, vector<128x128xf32>,
    return
  }
  func.func @transform_0(%arg0: i32) -> (i32, i32) {
    %c0_i32 = arith.constant 0 : i32
    %c0_i32_0 = arith.constant 0 : i32
    %c0_i32_1 = arith.constant 0 : i32
    return %c0_i32, %c0_i32_0 : i32, i32
  }
  func.func @transform_1(%arg0: i32) -> (i32, i32) {
    %c0_i32 = arith.constant 0 : i32
    %c0_i32_0 = arith.constant 0 : i32
    %c0_i32_1 = arith.constant 0 : i32
    return %c0_i32, %c0_i32_0 : i32, i32
  }
  func.func @transform_2(%arg0: i32) -> (i32, i32) {
    %c0_i32 = arith.constant 0 : i32
    %c0_i32_0 = arith.constant 0 : i32
    %c0_i32_1 = arith.constant 0 : i32
    return %c0_i32, %c0_i32_0 : i32, i32
  }
  func.func @transform_3(%arg0: i32) -> (i32, i32, i32) {
    %c0_i32 = arith.constant 0 : i32
    %c0_i32_0 = arith.constant 0 : i32
    %c0_i32_1 = arith.constant 0 : i32
    %c0_i32_2 = arith.constant 0 : i32
    return %c0_i32, %c0_i32_0, %c0_i32_1 : i32, i32, i32
  }
  func.func @transform_4(%arg0: i32) -> (i32, i32, i32) {
    %c0_i32 = arith.constant 0 : i32
    %c0_i32_0 = arith.constant 0 : i32
    %c0_i32_1 = arith.constant 0 : i32
    %c0_i32_2 = arith.constant 0 : i32
    return %c0_i32, %c0_i32_0, %c0_i32_1 : i32, i32, i32
  }
  func.func @transform_5(%arg0: i32) -> (i32, i32, i32) {
    %c0_i32 = arith.constant 0 : i32
    %c0_i32_0 = arith.constant 0 : i32
    %c0_i32_1 = arith.constant 0 : i32
    %c0_i32_2 = arith.constant 0 : i32
    return %c0_i32, %c0_i32_0, %c0_i32_1 : i32, i32, i32
  }
  func.func @transform_6(%arg0: i32) -> (i32, i32) {
    %c0_i32 = arith.constant 0 : i32
    %c0_i32_0 = arith.constant 0 : i32
    %c0_i32_1 = arith.constant 0 : i32
    return %c0_i32, %c0_i32_0 : i32, i32
  }
}

</mosaic_0001>

<bundles_post_ra>
// kernel: sage_regression2_forward.1
= control target key start
LH: loop header
LB: loop body
LE: loop exit
PB: predicated region body
PF: predicated region fallthrough
CT: control target
= control target key end

     0   :  { %v2139_v1 = vmov 0   ;;  %s2823_s1 = inlined_call_operand.vmem [shape: bf16[128,128], index: 1, kind: input, shape index: {}]   ;;  %s2824_s2 = inlined_call_operand.vmem [shape: f32[128,1], index: 2, kind: input, shape index: {}]   ;;  %s2825_s0 = inlined_call_operand.vmem [shape: bf16[128,128], index: 0, kind: input, shape index: {}]   ;;  %s2826_s4 = inlined_call_operand.vmem [shape: bf16[4,128,128], index: 4, kind: input, shape index: {}]   ;;  %s2827_s3 = inlined_call_operand.vmem [shape: bf16[4,128,128], index: 3, kind: input, shape index: {}]   ;;  %s2828_s5 = inlined_call_operand.vmem [shape: f32[4,1,128], index: 5, kind: input, shape index: {}]   ;;  %s2829_s6 = inlined_call_operand.vmem [shape: f32[128,128], index: 6, kind: output, shape index: {}]  }
   0x1   :  { %v2178_v0 = vld [vmem:[%s2823_s1 + $0x38] sm:$0xff]  ;;  %2124 = vset.pattern.permute.xlu0 %v2139_v1  ;;  %v39_v2 = vld [vmem:[%s2824_s2] sm:$0xff]  ;;  %2125 = vset.pattern.permute.xlu1 %v2139_v1  ;;  %v2187_v3 = vld [vmem:[%s2823_s1 + $0x30] sm:$0xff] }
   0x2   :  { %218 = vperm.xlu0 %2124, %v39_v2   ;;  %2126 = vset.pattern.permute.xlu2 %v2139_v1  ;;  %v41_v4 = vld [vmem:[%s2824_s2 + $0x10] sm:$0xff]  ;;  %v2196_v5 = vld [vmem:[%s2823_s1 + $0x28] sm:$0xff]  ;;  %v42_v7 = vld [vmem:[%s2824_s2 + $0x18] sm:$0xff] }
   0x3   :  { %167 = vmatpush.bf16.msra.mxu0 %v2178_v0  ;;  %228 = vperm.xlu1 %2125, %v41_v4   ;;  %v40_v6 = vld [vmem:[%s2824_s2 + $0x8] sm:$0xff]  ;;  %v2208_v8 = vld [vmem:[%s2823_s1 + $0x20] sm:$0xff]  ;;  %v2214_v9 = vld [vmem:[%s2823_s1 + $0x18] sm:$0xff] }
   0x4   :  { %v45_v10 = vld [vmem:[%s2824_s2 + $0x30] sm:$0xff]  ;;  %v46_v11 = vld [vmem:[%s2824_s2 + $0x38] sm:$0xff]  ;;  %v2232_v13 = vld [vmem:[%s2823_s1 + $0x8] sm:$0xff] }
   0x5   :  { %v2226_v12 = vld [vmem:[%s2823_s1 + $0x10] sm:$0xff]  ;;  %v48_v14 = vld [vmem:[%s2824_s2 + $0x48] sm:$0xff]  ;;  %v2244_v16 = vld [vmem:[%s2823_s1] sm:$0xff] }
   0x6   :  { %v49_v15 = vld [vmem:[%s2824_s2 + $0x50] sm:$0xff]  ;;  %v2249_v17 = vld [vmem:[%s2825_s0] sm:$0xff]  ;;  %v52_v19 = vld [vmem:[%s2824_s2 + $0x68] sm:$0xff] }
   0x7   :  { %168 = vmatpush.bf16.msra.mxu0 %v2187_v3  ;;  %v51_v18 = vld [vmem:[%s2824_s2 + $0x60] sm:$0xff]  ;;  %v54_v21 = vld [vmem:[%s2824_s2 + $0x78] sm:$0xff]  ;;  %v44_v22 = vld [vmem:[%s2824_s2 + $0x28] sm:$0xff] }
   0x8   :  { %v43_v20 = vld [vmem:[%s2824_s2 + $0x20] sm:$0xff]  ;;  %v2271_v23 = vld [vmem:[%s2825_s0 + $0x8] sm:$0xff]  ;;  %v50_v25 = vld [vmem:[%s2824_s2 + $0x58] sm:$0xff] }
   0x9   :  { %238 = vperm.xlu2 %2126, %v43_v20   ;;  %v47_v24 = vld [vmem:[%s2824_s2 + $0x40] sm:$0xff]  ;;  %v2283_v26 = vld [vmem:[%s2825_s0 + $0x10] sm:$0xff]  ;;  %v2292_v28 = vld [vmem:[%s2825_s0 + $0x18] sm:$0xff] }
   0xa   :  { %223 = vperm.xlu0 %2124, %v40_v6   ;;  %v53_v27 = vld [vmem:[%s2824_s2 + $0x70] sm:$0xff]  ;;  %v2298_v29 = vld [vmem:[%s2825_s0 + $0x20] sm:$0xff]  ;;  %v2074_v30 = vld [vmem:[%s2826_s4 + $0x38] sm:$0xff] }
   0xb   :  { %169 = vmatpush.bf16.msra.mxu0 %v2196_v5  ;;  %233 = vperm.xlu1 %2125, %v42_v7   ;;  %v2066_v31 = vld [vmem:[%s2827_s3 + $0x38] sm:$0xff]  ;;  %v2073_v32 = vld [vmem:[%s2826_s4 + $0x30] sm:$0xff]  ;;  %v2316_v34 = vld [vmem:[%s2825_s0 + $0x28] sm:$0xff] }
   0xc   :  { %400 = vmatpush.bf16.msra.mxu1 %v2074_v30  ;;  %497 = vmatpush.bf16.msra.mxu2 %v2066_v31  ;;  %v2065_v33 = vld [vmem:[%s2827_s3 + $0x30] sm:$0xff]  ;;  %v2072_v35 = vld [vmem:[%s2826_s4 + $0x28] sm:$0xff]  ;;  %v2071_v37 = vld [vmem:[%s2826_s4 + $0x20] sm:$0xff] }
   0xd   :  { %v2064_v36 = vld [vmem:[%s2827_s3 + $0x28] sm:$0xff]  ;;  %v2063_v38 = vld [vmem:[%s2827_s3 + $0x20] sm:$0xff]  ;;  %v2070_v39 = vld [vmem:[%s2826_s4 + $0x18] sm:$0xff] }
   0xe   :  { %v2062_v40 = vld [vmem:[%s2827_s3 + $0x18] sm:$0xff]  ;;  %v2069_v41 = vld [vmem:[%s2826_s4 + $0x10] sm:$0xff]  ;;  %v2068_v44 = vld [vmem:[%s2826_s4 + $0x8] sm:$0xff] }
   0xf   :  { %170 = vmatpush.bf16.msra.mxu0 %v2208_v8  ;;  %v2343_v42 = vld [vmem:[%s2825_s0 + $0x30] sm:$0xff]  ;;  %v2060_v45 = vld [vmem:[%s2827_s3 + $0x8] sm:$0xff]  ;;  %v2067_v46 = vld [vmem:[%s2826_s4] sm:$0xff] }
  0x10   :  { %401 = vmatpush.bf16.msra.mxu1 %v2073_v32  ;;  %498 = vmatpush.bf16.msra.mxu2 %v2065_v33  ;;  %v2061_v43 = vld [vmem:[%s2827_s3 + $0x10] sm:$0xff]  ;;  %v2059_v47 = vld [vmem:[%s2827_s3] sm:$0xff]  ;;  %v2365_v48 = vld [vmem:[%s2825_s0 + $0x38] sm:$0xff] }
  0x11   :  { %243 = vperm.xlu2 %2126, %v44_v22  }
  0x12   :  { %248 = vperm.xlu0 %2124, %v45_v10  }
  0x13   :  { %171 = vmatpush.bf16.msra.mxu0 %v2214_v9  ;;  %253 = vperm.xlu1 %2125, %v46_v11  }
  0x14   :  { %402 = vmatpush.bf16.msra.mxu1 %v2072_v35  ;;  %499 = vmatpush.bf16.msra.mxu2 %v2064_v36  ;;  %v2090_v35 = vld [vmem:[%s2826_s4 + $0x78] sm:$0xff] }
  0x17   :  { %172 = vmatpush.bf16.msra.mxu0 %v2226_v12 }
  0x18   :  { %403 = vmatpush.bf16.msra.mxu1 %v2071_v37  ;;  %500 = vmatpush.bf16.msra.mxu2 %v2063_v38  ;;  %v2088_v37 = vld [vmem:[%s2826_s4 + $0x68] sm:$0xff] }
  0x19   :  { %258 = vperm.xlu2 %2126, %v47_v24  }
  0x1a   :  { %263 = vperm.xlu0 %2124, %v48_v14  }
  0x1b   :  { %173 = vmatpush.bf16.msra.mxu0 %v2232_v13  ;;  %268 = vperm.xlu1 %2125, %v49_v15  }
  0x1c   :  { %404 = vmatpush.bf16.msra.mxu1 %v2070_v39  ;;  %501 = vmatpush.bf16.msra.mxu2 %v2062_v40 }
  0x1f   :  { %174 = vmatpush.bf16.msra.mxu0 %v2244_v16 }
  0x20   :  { %405 = vmatpush.bf16.msra.mxu1 %v2069_v41  ;;  %502 = vmatpush.bf16.msra.mxu2 %v2061_v43 }
  0x21   :  { %273 = vperm.xlu2 %2126, %v50_v25  }
  0x22   :  { %175 = vmatmul.bf16.vlgmr.msra.gmra.mxu0 %v2249_v17  ;;  %278 = vperm.xlu0 %2124, %v51_v18  }
  0x23   :  { %283 = vperm.xlu1 %2125, %v52_v19   ;;  %745 = vmatpush.bf16.msrb.mxu0 %v2090_v35 }
  0x24   :  { %406 = vmatpush.bf16.msra.mxu1 %v2068_v44  ;;  %503 = vmatpush.bf16.msra.mxu2 %v2060_v45 }
  0x28   :  { %407 = vmatpush.bf16.msra.mxu1 %v2067_v46  ;;  %504 = vmatpush.bf16.msra.mxu2 %v2059_v47  ;;  %v2086_v46 = vld [vmem:[%s2826_s4 + $0x58] sm:$0xff] }
  0x29   :  { %288 = vperm.xlu2 %2126, %v53_v27  }
  0x2a   :  { %293 = vperm.xlu0 %2124, %v54_v21  }
  0x2b   :  { %408 = vmatmul.bf16.vlgmr.msra.gmra.mxu1 %v2244_v16 }
  0x32   :  { %180 = vmatmul.bf16.gmra.mxu0 %v2271_v23 }
  0x3b   :  { %413 = vmatmul.bf16.gmra.mxu1 %v2232_v13 }
  0x42   :  { %185 = vmatmul.bf16.gmra.mxu0 %v2283_v26 }
  0x4b   :  { %418 = vmatmul.bf16.gmra.mxu1 %v2226_v12 }
  0x52   :  { %190 = vmatmul.bf16.gmra.mxu0 %v2292_v28 }
  0x5b   :  { %423 = vmatmul.bf16.gmra.mxu1 %v2214_v9 }
  0x62   :  { %195 = vmatmul.bf16.gmra.mxu0 %v2298_v29 }
  0x63   :  { %v2383_v63 = vpop.permute.xlu2 %238 }
  0x6b   :  { %v2385_v2 = vpop.permute.xlu2 %243  ;;  %428 = vmatmul.bf16.gmra.mxu1 %v2208_v8 }
  0x72   :  { %200 = vmatmul.bf16.gmra.mxu0 %v2316_v34 }
  0x73   :  { %v2399_v20 = vpop.permute.xlu2 %258 }
  0x74   :  { %v2369_v49 = vpop.permute.xlu0 %218 }
  0x75   :  { %v2376_v56 = vpop.permute.xlu1 %228 }
  0x7b   :  { %433 = vmatmul.bf16.gmra.mxu1 %v2196_v5  ;;  %v2406_v30 = vpop.permute.xlu2 %273 }
  0x7c   :  { %v2371_v51 = vpop.permute.xlu0 %223 }
  0x7d   :  { %v2378_v58 = vpop.permute.xlu1 %233 }
  0x82   :  { %205 = vmatmul.bf16.gmra.mxu0 %v2343_v42 }
  0x84   :  { %v2390_v12 = vpop.permute.xlu0 %248 }
  0x85   :  { %v2392_v13 = vpop.permute.xlu1 %253 }
  0x8b   :  { %438 = vmatmul.bf16.gmra.mxu1 %v2187_v3  ;;  %v2089_v3 = vld [vmem:[%s2826_s4 + $0x70] sm:$0xff] }
  0x8c   :  { %v2397_v19 = vpop.permute.xlu0 %263  ;;  %746 = vmatpush.bf16.msrb.mxu0 %v2089_v3 }
  0x8d   :  { %v2404_v27 = vpop.permute.xlu1 %268 }
  0x90   :  { %747 = vmatpush.bf16.msrb.mxu0 %v2088_v37 }
  0x92   :  { %210 = vmatmul.bf16.gmra.mxu0 %v2365_v48 }
  0x94   :  { %v2420_v38 = vpop.permute.xlu0 %278 }
  0x95   :  { %v2425_v39 = vpop.permute.xlu1 %283 }
  0x9b   :  { %443 = vmatmul.bf16.gmra.mxu1 %v2178_v0  ;;  %v2087_v0 = vld [vmem:[%s2826_s4 + $0x60] sm:$0xff] }
  0x9c   :  { %748 = vmatpush.bf16.msrb.mxu0 %v2087_v0 }
  0x9f   :  { %v176_v50 = vpop.f32.mrf.mxu0 }
  0xa0   :  { %v296_v53 = vmul.f32 %v2369_v49, %v176_v50  ;;  %749 = vmatpush.bf16.msrb.mxu0 %v2086_v46  ;;  %v2085_v50 = vld [vmem:[%s2826_s4 + $0x50] sm:$0xff] }
  0xa4   :  { %750 = vmatpush.bf16.msrb.mxu0 %v2085_v50 }
  0xa7   :  { %v178_v52 = vpop.f32.mrf.mxu0 }
  0xa8   :  { %v297_v54 = vmul.f32 %v2371_v51, %v178_v52  ;;  %v409_v47 = vpop.f32.mrf.mxu1  ;;  %v2435_v52 = vpop.permute.xlu0 %293 }
  0xaa   :  { %v312_v55 = vpack.c.bf16 %v297_v54, %v296_v53  ;;  %v2437_v53 = vpop.permute.xlu2 %288 }
  0xac   :  { %505 = vmatmul.bf16.vlgmr.msra.gmra.mxu2 %v312_v55  ;;  %v2084_v55 = vld [vmem:[%s2826_s4 + $0x48] sm:$0xff] }
  0xad   :  { %751 = vmatpush.bf16.msrb.mxu0 %v2084_v55 }
  0xaf   :  { %v181_v57 = vpop.f32.mrf.mxu0 }
  0xb0   :  { %v298_v60 = vmul.f32 %v2376_v56, %v181_v57 }
  0xb7   :  { %v183_v59 = vpop.f32.mrf.mxu0 }
  0xb8   :  { %v299_v61 = vmul.f32 %v2378_v58, %v183_v59 }
  0xba   :  { %v313_v62 = vpack.c.bf16 %v299_v61, %v298_v60  ;;  %v411_v61 = vpop.f32.mrf.mxu1 }
  0xbc   :  { %510 = vmatmul.bf16.gmra.mxu2 %v313_v62  ;;  %v2083_v62 = vld [vmem:[%s2826_s4 + $0x40] sm:$0xff] }
  0xbd   :  { %752 = vmatpush.bf16.msrb.mxu0 %v2083_v62 }
  0xbf   :  { %v186_v1 = vpop.f32.mrf.mxu0 }
  0xc0   :  { %v300_v6 = vmul.f32 %v2383_v63, %v186_v1 }
  0xc2   :  { %v414_v1 = vpop.f32.mrf.mxu1 }
  0xc7   :  { %v188_v4 = vpop.f32.mrf.mxu0 }
  0xc8   :  { %v301_v7 = vmul.f32 %v2385_v2, %v188_v4 }
  0xca   :  { %v314_v10 = vpack.c.bf16 %v301_v7, %v300_v6  ;;  %v416_v6 = vpop.f32.mrf.mxu1 }
  0xcc   :  { %515 = vmatmul.bf16.gmra.mxu2 %v314_v10  ;;  %v2450_v10 = vld [vmem:[%s2828_s5] ss:$0 sm:$0xff] }
  0xcf   :  { %v191_v11 = vpop.f32.mrf.mxu0 }
  0xd0   :  { %v302_v14 = vmul.f32 %v2390_v12, %v191_v11 }
  0xd7   :  { %v193_v9 = vpop.f32.mrf.mxu0 }
  0xd8   :  { %v303_v15 = vmul.f32 %v2392_v13, %v193_v9 }
  0xda   :  { %v315_v16 = vpack.c.bf16 %v303_v15, %v302_v14  ;;  %v419_v15 = vpop.f32.mrf.mxu1 }
  0xdc   :  { %520 = vmatmul.bf16.gmra.mxu2 %v315_v16 }
  0xdf   :  { %v196_v18 = vpop.f32.mrf.mxu0 }
  0xe0   :  { %v304_v21 = vmul.f32 %v2399_v20, %v196_v18 }
  0xe7   :  { %v198_v8 = vpop.f32.mrf.mxu0 }
  0xe8   :  { %v305_v22 = vmul.f32 %v2397_v19, %v198_v8 }
  0xea   :  { %v316_v24 = vpack.c.bf16 %v305_v22, %v304_v21 }
  0xec   :  { %525 = vmatmul.bf16.gmra.mxu2 %v316_v24  ;;  %v421_v24 = vpop.f32.mrf.mxu1 }
  0xef   :  { %v201_v25 = vpop.f32.mrf.mxu0 }
  0xf0   :  { %v306_v31 = vmul.f32 %v2404_v27, %v201_v25 }
  0xf7   :  { %v203_v5 = vpop.f32.mrf.mxu0 }
  0xf8   :  { %v307_v32 = vmul.f32 %v2406_v30, %v203_v5 }
  0xfa   :  { %v317_v33 = vpack.c.bf16 %v307_v32, %v306_v31 }
  0xfc   :  { %530 = vmatmul.bf16.gmra.mxu2 %v317_v33 }
  0xff   :  { %v206_v36 = vpop.f32.mrf.mxu0 }
 0x100   :  { %v308_v41 = vmul.f32 %v2420_v38, %v206_v36  ;;  %v424_v36 = vpop.f32.mrf.mxu1 }
 0x107   :  { %v208_v40 = vpop.f32.mrf.mxu0 }
 0x108   :  { %v309_v43 = vmul.f32 %v2425_v39, %v208_v40 }
 0x10a   :  { %v318_v44 = vpack.c.bf16 %v309_v43, %v308_v41  ;;  %v426_v43 = vpop.f32.mrf.mxu1 }
 0x10c   :  { %535 = vmatmul.bf16.gmra.mxu2 %v318_v44 }
 0x10f   :  { %v211_v45 = vpop.f32.mrf.mxu0 }
 0x110   :  { %v310_v57 = vmul.f32 %v2437_v53, %v211_v45 }
 0x117   :  { %v213_v54 = vpop.f32.mrf.mxu0 }
 0x118   :  { %v311_v59 = vmul.f32 %v2435_v52, %v213_v54 }
 0x11a   :  { %v319_v60 = vpack.c.bf16 %v311_v59, %v310_v57  ;;  %v429_v57 = vpop.f32.mrf.mxu1 }
 0x11c   :  { %540 = vmatmul.bf16.gmra.mxu2 %v319_v60 }
 0x12f   :  { %v506_v4 = vpop.f32.mrf.mxu2 }
 0x130   :  { %v507_v7 = vadd.f32 %v506_v4, %v409_v47  ;;  %v431_v4 = vpop.f32.mrf.mxu1 }
 0x132   :  { %v550_v9 = vadd.f32 %v2450_v10, %v507_v7 }
 0x134   :  { %v566_v18 = vmax.f32 %v550_v9, 0.0 }
 0x137   :  { %v508_v11 = vpop.f32.mrf.mxu2 }
 0x138   :  { %v509_v14 = vadd.f32 %v508_v11, %v411_v61 }
 0x13a   :  { %v551_v16 = vadd.f32 %v2450_v10, %v509_v14 }
 0x13c   :  { %v567_v8 = vmax.f32 %v551_v16, 0.0 }
 0x13e   :  { %v2454_v21 = vpack.c.bf16 %v567_v8, %v566_v18 }
 0x13f   :  { %v511_v22 = vpop.f32.mrf.mxu2 }
 0x140   :  { %753 = vmatmul.bf16.vlgmr.msrb.gmra.mxu0 %v2454_v21  ;;  %v512_v25 = vadd.f32 %v511_v22, %v414_v1 }
 0x142   :  { %v552_v31 = vadd.f32 %v2450_v10, %v512_v25 }
 0x144   :  { %v568_v35 = vmax.f32 %v552_v31, 0.0 }
 0x147   :  { %v513_v5 = vpop.f32.mrf.mxu2 }
 0x148   :  { %v514_v32 = vadd.f32 %v513_v5, %v416_v6 }
 0x14a   :  { %v553_v33 = vadd.f32 %v2450_v10, %v514_v32 }
 0x14c   :  { %v569_v3 = vmax.f32 %v553_v33, 0.0 }
 0x14e   :  { %v2459_v37 = vpack.c.bf16 %v569_v3, %v568_v35 }
 0x14f   :  { %v516_v0 = vpop.f32.mrf.mxu2 }
 0x150   :  { %758 = vmatmul.bf16.gmra.mxu0 %v2459_v37  ;;  %v517_v40 = vadd.f32 %v516_v0, %v419_v15  ;;  %v434_v15 = vpop.f32.mrf.mxu1 }
 0x152   :  { %v554_v44 = vadd.f32 %v2450_v10, %v517_v40 }
 0x154   :  { %v570_v47 = vmax.f32 %v554_v44, 0.0 }
 0x157   :  { %v518_v41 = vpop.f32.mrf.mxu2 }
 0x158   :  { %v519_v45 = vadd.f32 %v518_v41, %v421_v24  ;;  %v436_v31 = vpop.f32.mrf.mxu1 }
 0x15a   :  { %v555_v46 = vadd.f32 %v2450_v10, %v519_v45 }
 0x15c   :  { %v571_v50 = vmax.f32 %v555_v46, 0.0 }
 0x15e   :  { %v2464_v54 = vpack.c.bf16 %v571_v50, %v570_v47 }
 0x15f   :  { %v521_v55 = vpop.f32.mrf.mxu2 }
 0x160   :  { %763 = vmatmul.bf16.gmra.mxu0 %v2464_v54  ;;  %v522_v59 = vadd.f32 %v521_v55, %v424_v36  ;;  %v439_v0 = vpop.f32.mrf.mxu1 }
 0x162   :  { %v556_v61 = vadd.f32 %v2450_v10, %v522_v59 }
 0x164   :  { %v572_v6 = vmax.f32 %v556_v61, 0.0 }
 0x167   :  { %v523_v60 = vpop.f32.mrf.mxu2 }
 0x168   :  { %v524_v62 = vadd.f32 %v523_v60, %v426_v43  ;;  %v441_v46 = vpop.f32.mrf.mxu1 }
 0x16a   :  { %v557_v1 = vadd.f32 %v2450_v10, %v524_v62 }
 0x16c   :  { %v573_v7 = vmax.f32 %v557_v1, 0.0 }
 0x16e   :  { %v585_v11 = vpack.c.bf16 %v573_v7, %v572_v6 }
 0x16f   :  { %v526_v9 = vpop.f32.mrf.mxu2 }
 0x170   :  { %768 = vmatmul.bf16.gmra.mxu0 %v585_v11  ;;  %v527_v14 = vadd.f32 %v526_v9, %v429_v57  ;;  %v444_v62 = vpop.f32.mrf.mxu1 }
 0x172   :  { %v558_v18 = vadd.f32 %v2450_v10, %v527_v14 }
 0x174   :  { %v574_v24 = vmax.f32 %v558_v18, 0.0 }
 0x177   :  { %v528_v16 = vpop.f32.mrf.mxu2 }
 0x178   :  { %v529_v8 = vadd.f32 %v528_v16, %v431_v4  ;;  %v446_v7 = vpop.f32.mrf.mxu1 }
 0x17a   :  { %v559_v22 = vadd.f32 %v2450_v10, %v529_v8 }
 0x17c   :  { %v575_v25 = vmax.f32 %v559_v22, 0.0 }
 0x17e   :  { %v586_v5 = vpack.c.bf16 %v575_v25, %v574_v24  ;;  %v2077_v24 = vld [vmem:[%s2827_s3 + $0x50] sm:$0xff]  ;;  %v2076_v25 = vld [vmem:[%s2827_s3 + $0x48] sm:$0xff] }
 0x17f   :  { %v531_v32 = vpop.f32.mrf.mxu2 }
 0x180   :  { %773 = vmatmul.bf16.gmra.mxu0 %v586_v5  ;;  %v532_v33 = vadd.f32 %v531_v32, %v434_v15 }
 0x182   :  { %v560_v3 = vadd.f32 %v2450_v10, %v532_v33 }
 0x184   :  { %v576_v41 = vmax.f32 %v560_v3, 0.0 }
 0x187   :  { %v533_v35 = vpop.f32.mrf.mxu2 }
 0x188   :  { %v534_v36 = vadd.f32 %v533_v35, %v436_v31 }
 0x18a   :  { %v561_v40 = vadd.f32 %v2450_v10, %v534_v36 }
 0x18c   :  { %v577_v43 = vmax.f32 %v561_v40, 0.0 }
 0x18e   :  { %v587_v44 = vpack.c.bf16 %v577_v43, %v576_v41 }
 0x18f   :  { %v536_v45 = vpop.f32.mrf.mxu2 }
 0x190   :  { %778 = vmatmul.bf16.gmra.mxu0 %v587_v44  ;;  %v537_v47 = vadd.f32 %v536_v45, %v439_v0 }
 0x192   :  { %v562_v55 = vadd.f32 %v2450_v10, %v537_v47 }
 0x194   :  { %v578_v60 = vmax.f32 %v562_v55, 0.0 }
 0x197   :  { %v538_v50 = vpop.f32.mrf.mxu2 }
 0x198   :  { %v539_v57 = vadd.f32 %v538_v50, %v441_v46 }
 0x19a   :  { %v563_v59 = vadd.f32 %v2450_v10, %v539_v57 }
 0x19c   :  { %v579_v61 = vmax.f32 %v563_v59, 0.0 }
 0x19e   :  { %v588_v1 = vpack.c.bf16 %v579_v61, %v578_v60 }
 0x19f   :  { %v541_v4 = vpop.f32.mrf.mxu2 }
 0x1a0   :  { %783 = vmatmul.bf16.gmra.mxu0 %v588_v1  ;;  %v542_v6 = vadd.f32 %v541_v4, %v444_v62 }
 0x1a2   :  { %v564_v14 = vadd.f32 %v2450_v10, %v542_v6 }
 0x1a4   :  { %v580_v18 = vmax.f32 %v564_v14, 0.0 }
 0x1a7   :  { %v543_v9 = vpop.f32.mrf.mxu2 }
 0x1a8   :  { %v544_v15 = vadd.f32 %v543_v9, %v446_v7 }
 0x1aa   :  { %v565_v16 = vadd.f32 %v2450_v10, %v544_v15  ;;  %v2082_v10 = vld [vmem:[%s2827_s3 + $0x78] sm:$0xff] }
 0x1ab   :  { %842 = vmatpush.bf16.msrb.mxu1 %v2082_v10 }
 0x1ac   :  { %v581_v8 = vmax.f32 %v565_v16, 0.0 }
 0x1ae   :  { %v589_v22 = vpack.c.bf16 %v581_v8, %v580_v18  ;;  %v2106_v18 = vld [vmem:[%s2826_s4 + $0xb8] sm:$0xff] }
 0x1b0   :  { %590 = vmatpush.bf16.msra.mxu3 %v589_v22  ;;  %788 = vmatmul.bf16.gmra.mxu0 %v589_v22  ;;  %v2105_v22 = vld [vmem:[%s2826_s4 + $0xb0] sm:$0xff] }
 0x1b4   :  { %591 = vmatpush.bf16.msra.mxu3 %v588_v1 }
 0x1b8   :  { %592 = vmatpush.bf16.msra.mxu3 %v587_v44 }
 0x1bc   :  { %593 = vmatpush.bf16.msra.mxu3 %v586_v5  ;;  %v2075_v5 = vld [vmem:[%s2827_s3 + $0x40] sm:$0xff] }
 0x1c0   :  { %594 = vmatpush.bf16.msra.mxu3 %v585_v11  ;;  %v2078_v11 = vld [vmem:[%s2827_s3 + $0x58] sm:$0xff] }
 0x1c4   :  { %595 = vmatpush.bf16.msra.mxu3 %v2464_v54  ;;  %v2079_v54 = vld [vmem:[%s2827_s3 + $0x60] sm:$0xff] }
 0x1c8   :  { %596 = vmatpush.bf16.msra.mxu3 %v2459_v37  ;;  %v2080_v37 = vld [vmem:[%s2827_s3 + $0x68] sm:$0xff] }
 0x1cc   :  { %597 = vmatpush.bf16.msra.mxu3 %v2454_v21  ;;  %v2081_v21 = vld [vmem:[%s2827_s3 + $0x70] sm:$0xff] }
 0x1cd   :  { %843 = vmatpush.bf16.msrb.mxu1 %v2081_v21  ;;  %v2104_v21 = vld [vmem:[%s2826_s4 + $0xa8] sm:$0xff] }
 0x1cf   :  { %598 = vmatmul.bf16.vlgmr.msra.gmra.mxu3 %v2249_v17 }
 0x1d0   :  { %1091 = vmatpush.bf16.msrb.mxu3 %v2106_v18 }
 0x1d1   :  { %844 = vmatpush.bf16.msrb.mxu1 %v2080_v37  ;;  %v2103_v37 = vld [vmem:[%s2826_s4 + $0xa0] sm:$0xff] }
 0x1d4   :  { %1092 = vmatpush.bf16.msrb.mxu3 %v2105_v22 }
 0x1d5   :  { %845 = vmatpush.bf16.msrb.mxu1 %v2079_v54 }
 0x1d8   :  { %1093 = vmatpush.bf16.msrb.mxu3 %v2104_v21 }
 0x1d9   :  { %846 = vmatpush.bf16.msrb.mxu1 %v2078_v11 }
 0x1dc   :  { %1094 = vmatpush.bf16.msrb.mxu3 %v2103_v37 }
 0x1dd   :  { %847 = vmatpush.bf16.msrb.mxu1 %v2077_v24 }
 0x1df   :  { %603 = vmatmul.bf16.gmra.mxu3 %v2271_v23 }
 0x1e1   :  { %848 = vmatpush.bf16.msrb.mxu1 %v2076_v25  ;;  %v2102_v25 = vld [vmem:[%s2826_s4 + $0x98] sm:$0xff] }
 0x1e2   :  { %1095 = vmatpush.bf16.msrb.mxu3 %v2102_v25 }
 0x1e5   :  { %849 = vmatpush.bf16.msrb.mxu1 %v2075_v5 }
 0x1ef   :  { %608 = vmatmul.bf16.gmra.mxu3 %v2283_v26 }
 0x1ff   :  { %613 = vmatmul.bf16.gmra.mxu3 %v2292_v28 }
 0x20f   :  { %618 = vmatmul.bf16.gmra.mxu3 %v2298_v29 }
 0x21f   :  { %623 = vmatmul.bf16.gmra.mxu3 %v2316_v34 }
 0x22f   :  { %628 = vmatmul.bf16.gmra.mxu3 %v2343_v42 }
 0x23f   :  { %633 = vmatmul.bf16.gmra.mxu3 %v2365_v48 }
 0x252   :  { %v599_v31 = vpop.f32.mrf.mxu3 }
 0x253   :  { %v639_v33 = vmul.f32 %v599_v31, %v2369_v49  ;;  %v754_v31 = vpop.f32.mrf.mxu0 }
 0x25a   :  { %v601_v32 = vpop.f32.mrf.mxu3 }
 0x25b   :  { %v640_v35 = vmul.f32 %v601_v32, %v2371_v51  ;;  %v2101_v32 = vld [vmem:[%s2826_s4 + $0x90] sm:$0xff] }
 0x25c   :  { %1096 = vmatpush.bf16.msrb.mxu3 %v2101_v32 }
 0x25d   :  { %v655_v3 = vpack.c.bf16 %v640_v35, %v639_v33  ;;  %v2100_v35 = vld [vmem:[%s2826_s4 + $0x88] sm:$0xff] }
 0x25f   :  { %850 = vmatmul.bf16.vlgmr.msrb.gmra.mxu1 %v655_v3  ;;  %v756_v3 = vpop.f32.mrf.mxu0 }
 0x260   :  { %1097 = vmatpush.bf16.msrb.mxu3 %v2100_v35 }
 0x262   :  { %v604_v36 = vpop.f32.mrf.mxu3 }
 0x263   :  { %v641_v40 = vmul.f32 %v604_v36, %v2376_v56  ;;  %v2099_v36 = vld [vmem:[%s2826_s4 + $0x80] sm:$0xff] }
 0x264   :  { %1098 = vmatpush.bf16.msrb.mxu3 %v2099_v36 }
 0x26a   :  { %v606_v0 = vpop.f32.mrf.mxu3 }
 0x26b   :  { %v642_v41 = vmul.f32 %v606_v0, %v2378_v58 }
 0x26d   :  { %v656_v43 = vpack.c.bf16 %v642_v41, %v641_v40 }
 0x26f   :  { %855 = vmatmul.bf16.gmra.mxu1 %v656_v43 }
 0x272   :  { %v609_v44 = vpop.f32.mrf.mxu3 }
 0x273   :  { %v643_v46 = vmul.f32 %v609_v44, %v2383_v63  ;;  %v759_v44 = vpop.f32.mrf.mxu0 }
 0x27a   :  { %v611_v45 = vpop.f32.mrf.mxu3 }
 0x27b   :  { %v644_v47 = vmul.f32 %v611_v45, %v2385_v2  ;;  %v761_v45 = vpop.f32.mrf.mxu0 }
 0x27d   :  { %v657_v50 = vpack.c.bf16 %v644_v47, %v643_v46 }
 0x27f   :  { %860 = vmatmul.bf16.gmra.mxu1 %v657_v50  ;;  %v2555_v50 = vld [vmem:[%s2828_s5 + $0x1] ss:$0 sm:$0xff] }
 0x282   :  { %v614_v55 = vpop.f32.mrf.mxu3 }
 0x283   :  { %v645_v59 = vmul.f32 %v614_v55, %v2390_v12 }
 0x28a   :  { %v616_v57 = vpop.f32.mrf.mxu3 }
 0x28b   :  { %v646_v60 = vmul.f32 %v616_v57, %v2392_v13 }
 0x28d   :  { %v658_v61 = vpack.c.bf16 %v646_v60, %v645_v59  ;;  %v764_v60 = vpop.f32.mrf.mxu0 }
 0x28f   :  { %865 = vmatmul.bf16.gmra.mxu1 %v658_v61 }
 0x292   :  { %v619_v62 = vpop.f32.mrf.mxu3 }
 0x293   :  { %v647_v4 = vmul.f32 %v619_v62, %v2399_v20 }
 0x29a   :  { %v621_v1 = vpop.f32.mrf.mxu3 }
 0x29b   :  { %v648_v6 = vmul.f32 %v621_v1, %v2397_v19 }
 0x29d   :  { %v659_v7 = vpack.c.bf16 %v648_v6, %v647_v4 }
 0x29f   :  { %870 = vmatmul.bf16.gmra.mxu1 %v659_v7  ;;  %v766_v7 = vpop.f32.mrf.mxu0 }
 0x2a2   :  { %v624_v9 = vpop.f32.mrf.mxu3 }
 0x2a3   :  { %v649_v15 = vmul.f32 %v624_v9, %v2404_v27 }
 0x2aa   :  { %v626_v14 = vpop.f32.mrf.mxu3 }
 0x2ab   :  { %v650_v16 = vmul.f32 %v626_v14, %v2406_v30 }
 0x2ad   :  { %v660_v8 = vpack.c.bf16 %v650_v16, %v649_v15 }
 0x2af   :  { %875 = vmatmul.bf16.gmra.mxu1 %v660_v8 }
 0x2b2   :  { %v629_v10 = vpop.f32.mrf.mxu3 }
 0x2b3   :  { %v651_v11 = vmul.f32 %v629_v10, %v2420_v38  ;;  %v769_v10 = vpop.f32.mrf.mxu0 }
 0x2ba   :  { %v631_v54 = vpop.f32.mrf.mxu3 }
 0x2bb   :  { %v652_v24 = vmul.f32 %v631_v54, %v2425_v39 }
 0x2bd   :  { %v661_v5 = vpack.c.bf16 %v652_v24, %v651_v11  ;;  %v771_v11 = vpop.f32.mrf.mxu0 }
 0x2bf   :  { %880 = vmatmul.bf16.gmra.mxu1 %v661_v5 }
 0x2c2   :  { %v634_v33 = vpop.f32.mrf.mxu3 }
 0x2c3   :  { %v653_v40 = vmul.f32 %v634_v33, %v2437_v53 }
 0x2c5   :  { %v774_v36 = vpop.f32.mrf.mxu0 }
 0x2ca   :  { %v636_v0 = vpop.f32.mrf.mxu3 }
 0x2cb   :  { %v654_v41 = vmul.f32 %v636_v0, %v2435_v52 }
 0x2cd   :  { %v662_v43 = vpack.c.bf16 %v654_v41, %v653_v40 }
 0x2cf   :  { %885 = vmatmul.bf16.gmra.mxu1 %v662_v43 }
 0x2dc   :  { %v851_v46 = vpop.f32.mrf.mxu1 }
 0x2dd   :  { %v852_v47 = vadd.f32 %v851_v46, %v754_v31 }
 0x2df   :  { %v896_v57 = vadd.f32 %v2555_v50, %v852_v47 }
 0x2e1   :  { %v912_v62 = vmax.f32 %v896_v57, 0.0 }
 0x2e4   :  { %v853_v55 = vpop.f32.mrf.mxu1 }
 0x2e5   :  { %v854_v59 = vadd.f32 %v853_v55, %v756_v3 }
 0x2e7   :  { %v897_v61 = vadd.f32 %v2555_v50, %v854_v59 }
 0x2e9   :  { %v913_v1 = vmax.f32 %v897_v61, 0.0 }
 0x2eb   :  { %v2559_v4 = vpack.c.bf16 %v913_v1, %v912_v62 }
 0x2ec   :  { %v856_v6 = vpop.f32.mrf.mxu1 }
 0x2ed   :  { %1099 = vmatmul.bf16.vlgmr.msrb.gmra.mxu3 %v2559_v4  ;;  %v857_v9 = vadd.f32 %v856_v6, %v759_v44 }
 0x2ef   :  { %v898_v15 = vadd.f32 %v2555_v50, %v857_v9 }
 0x2f1   :  { %v914_v8 = vmax.f32 %v898_v15, 0.0 }
 0x2f4   :  { %v858_v14 = vpop.f32.mrf.mxu1 }
 0x2f5   :  { %v859_v16 = vadd.f32 %v858_v14, %v761_v45  ;;  %v776_v45 = vpop.f32.mrf.mxu0 }
 0x2f7   :  { %v899_v18 = vadd.f32 %v2555_v50, %v859_v16 }
 0x2f9   :  { %v915_v22 = vmax.f32 %v899_v18, 0.0 }
 0x2fb   :  { %v2564_v21 = vpack.c.bf16 %v915_v22, %v914_v8 }
 0x2fc   :  { %v861_v37 = vpop.f32.mrf.mxu1 }
 0x2fd   :  { %1104 = vmatmul.bf16.gmra.mxu3 %v2564_v21  ;;  %v862_v54 = vadd.f32 %v861_v37, %v764_v60  ;;  %v779_v60 = vpop.f32.mrf.mxu0 }
 0x2ff   :  { %v900_v25 = vadd.f32 %v2555_v50, %v862_v54 }
 0x301   :  { %v916_v32 = vmax.f32 %v900_v25, 0.0 }
 0x304   :  { %v863_v24 = vpop.f32.mrf.mxu1 }
 0x305   :  { %v864_v5 = vadd.f32 %v863_v24, %v766_v7  ;;  %v781_v15 = vpop.f32.mrf.mxu0 }
 0x307   :  { %v901_v31 = vadd.f32 %v2555_v50, %v864_v5 }
 0x309   :  { %v917_v33 = vmax.f32 %v901_v31, 0.0 }
 0x30b   :  { %v2569_v35 = vpack.c.bf16 %v917_v33, %v916_v32 }
 0x30c   :  { %v866_v3 = vpop.f32.mrf.mxu1 }
 0x30d   :  { %1109 = vmatmul.bf16.gmra.mxu3 %v2569_v35  ;;  %v867_v0 = vadd.f32 %v866_v3, %v769_v10  ;;  %v784_v37 = vpop.f32.mrf.mxu0 }
 0x30f   :  { %v902_v41 = vadd.f32 %v2555_v50, %v867_v0 }
 0x311   :  { %v918_v46 = vmax.f32 %v902_v41, 0.0 }
 0x314   :  { %v868_v40 = vpop.f32.mrf.mxu1 }
 0x315   :  { %v869_v43 = vadd.f32 %v868_v40, %v771_v11  ;;  %v786_v31 = vpop.f32.mrf.mxu0 }
 0x317   :  { %v903_v44 = vadd.f32 %v2555_v50, %v869_v43 }
 0x319   :  { %v919_v47 = vmax.f32 %v903_v44, 0.0 }
 0x31b   :  { %v931_v55 = vpack.c.bf16 %v919_v47, %v918_v46 }
 0x31c   :  { %v871_v57 = vpop.f32.mrf.mxu1 }
 0x31d   :  { %1114 = vmatmul.bf16.gmra.mxu3 %v931_v55  ;;  %v872_v59 = vadd.f32 %v871_v57, %v774_v36  ;;  %v789_v43 = vpop.f32.mrf.mxu0 }
 0x31f   :  { %v904_v62 = vadd.f32 %v2555_v50, %v872_v59 }
 0x321   :  { %v920_v7 = vmax.f32 %v904_v62, 0.0 }
 0x324   :  { %v873_v61 = vpop.f32.mrf.mxu1 }
 0x325   :  { %v874_v1 = vadd.f32 %v873_v61, %v776_v45  ;;  %v791_v47 = vpop.f32.mrf.mxu0 }
 0x327   :  { %v905_v6 = vadd.f32 %v2555_v50, %v874_v1 }
 0x329   :  { %v921_v9 = vmax.f32 %v905_v6, 0.0 }
 0x32b   :  { %v932_v14 = vpack.c.bf16 %v921_v9, %v920_v7 }
 0x32c   :  { %v876_v16 = vpop.f32.mrf.mxu1 }
 0x32d   :  { %1119 = vmatmul.bf16.gmra.mxu3 %v932_v14  ;;  %v877_v18 = vadd.f32 %v876_v16, %v779_v60 }
 0x32f   :  { %v906_v22 = vadd.f32 %v2555_v50, %v877_v18 }
 0x331   :  { %v922_v11 = vmax.f32 %v906_v22, 0.0 }
 0x334   :  { %v878_v8 = vpop.f32.mrf.mxu1 }
 0x335   :  { %v879_v10 = vadd.f32 %v878_v8, %v781_v15 }
 0x337   :  { %v907_v54 = vadd.f32 %v2555_v50, %v879_v10 }
 0x339   :  { %v923_v24 = vmax.f32 %v907_v54, 0.0 }
 0x33b   :  { %v933_v25 = vpack.c.bf16 %v923_v24, %v922_v11 }
 0x33c   :  { %v881_v5 = vpop.f32.mrf.mxu1 }
 0x33d   :  { %1124 = vmatmul.bf16.gmra.mxu3 %v933_v25  ;;  %v882_v32 = vadd.f32 %v881_v5, %v784_v37 }
 0x33f   :  { %v908_v3 = vadd.f32 %v2555_v50, %v882_v32 }
 0x341   :  { %v924_v40 = vmax.f32 %v908_v3, 0.0 }
 0x344   :  { %v883_v33 = vpop.f32.mrf.mxu1 }
 0x345   :  { %v884_v36 = vadd.f32 %v883_v33, %v786_v31 }
 0x347   :  { %v909_v0 = vadd.f32 %v2555_v50, %v884_v36 }
 0x349   :  { %v925_v41 = vmax.f32 %v909_v0, 0.0 }
 0x34b   :  { %v934_v44 = vpack.c.bf16 %v925_v41, %v924_v40 }
 0x34c   :  { %v886_v45 = vpop.f32.mrf.mxu1 }
 0x34d   :  { %1129 = vmatmul.bf16.gmra.mxu3 %v934_v44  ;;  %v887_v46 = vadd.f32 %v886_v45, %v789_v43 }
 0x34f   :  { %v910_v59 = vadd.f32 %v2555_v50, %v887_v46  ;;  %v2121_v46 = vld [vmem:[%s2826_s4 + $0xf0] sm:$0xff] }
 0x351   :  { %v926_v62 = vmax.f32 %v910_v59, 0.0  ;;  %v2119_v59 = vld [vmem:[%s2826_s4 + $0xe0] sm:$0xff] }
 0x354   :  { %v888_v57 = vpop.f32.mrf.mxu1 }
 0x355   :  { %v889_v60 = vadd.f32 %v888_v57, %v791_v47  ;;  %v2120_v57 = vld [vmem:[%s2826_s4 + $0xe8] sm:$0xff] }
 0x357   :  { %v911_v61 = vadd.f32 %v2555_v50, %v889_v60  ;;  %v2098_v50 = vld [vmem:[%s2827_s3 + $0xb8] sm:$0xff] }
 0x358   :  { %1188 = vmatpush.bf16.msra.mxu0 %v2098_v50 }
 0x359   :  { %v927_v1 = vmax.f32 %v911_v61, 0.0 }
 0x35b   :  { %v935_v6 = vpack.c.bf16 %v927_v1, %v926_v62  ;;  %v2118_v1 = vld [vmem:[%s2826_s4 + $0xd8] sm:$0xff] }
 0x35d   :  { %936 = vmatpush.bf16.msrb.mxu2 %v935_v6  ;;  %1134 = vmatmul.bf16.gmra.mxu3 %v935_v6 }
 0x361   :  { %937 = vmatpush.bf16.msrb.mxu2 %v934_v44  ;;  %v2122_v44 = vld [vmem:[%s2826_s4 + $0xf8] sm:$0xff] }
 0x365   :  { %938 = vmatpush.bf16.msrb.mxu2 %v933_v25 }
 0x369   :  { %939 = vmatpush.bf16.msrb.mxu2 %v932_v14 }
 0x36d   :  { %940 = vmatpush.bf16.msrb.mxu2 %v931_v55 }
 0x370   :  { %v1100_v50 = vpop.f32.mrf.mxu3 }
 0x371   :  { %941 = vmatpush.bf16.msrb.mxu2 %v2569_v35 }
 0x375   :  { %942 = vmatpush.bf16.msrb.mxu2 %v2564_v21 }
 0x379   :  { %943 = vmatpush.bf16.msrb.mxu2 %v2559_v4  ;;  %v2097_v4 = vld [vmem:[%s2827_s3 + $0xb0] sm:$0xff] }
 0x37a   :  { %1189 = vmatpush.bf16.msra.mxu0 %v2097_v4  ;;  %v2117_v4 = vld [vmem:[%s2826_s4 + $0xd0] sm:$0xff] }
 0x37c   :  { %944 = vmatmul.bf16.vlgmr.msrb.gmra.mxu2 %v2249_v17  ;;  %v2096_v17 = vld [vmem:[%s2827_s3 + $0xa8] sm:$0xff] }
 0x37d   :  { %1437 = vmatpush.bf16.msra.mxu2 %v2122_v44 }
 0x37e   :  { %1190 = vmatpush.bf16.msra.mxu0 %v2096_v17 }
 0x381   :  { %1438 = vmatpush.bf16.msra.mxu2 %v2121_v46 }
 0x385   :  { %1439 = vmatpush.bf16.msra.mxu2 %v2120_v57 }
 0x389   :  { %1440 = vmatpush.bf16.msra.mxu2 %v2119_v59 }
 0x38c   :  { %949 = vmatmul.bf16.gmra.mxu2 %v2271_v23  ;;  %v2095_v23 = vld [vmem:[%s2827_s3 + $0xa0] sm:$0xff] }
 0x38d   :  { %1191 = vmatpush.bf16.msra.mxu0 %v2095_v23  ;;  %1441 = vmatpush.bf16.msra.mxu2 %v2118_v1  ;;  %v2116_v23 = vld [vmem:[%s2826_s4 + $0xc8] sm:$0xff] }
 0x391   :  { %1442 = vmatpush.bf16.msra.mxu2 %v2117_v4 }
 0x395   :  { %1443 = vmatpush.bf16.msra.mxu2 %v2116_v23 }
 0x39c   :  { %954 = vmatmul.bf16.gmra.mxu2 %v2283_v26  ;;  %v2094_v26 = vld [vmem:[%s2827_s3 + $0x98] sm:$0xff] }
 0x39d   :  { %1192 = vmatpush.bf16.msra.mxu0 %v2094_v26  ;;  %v1102_v26 = vpop.f32.mrf.mxu3 }
 0x3ac   :  { %959 = vmatmul.bf16.gmra.mxu2 %v2292_v28  ;;  %v2093_v28 = vld [vmem:[%s2827_s3 + $0x90] sm:$0xff] }
 0x3ad   :  { %1193 = vmatpush.bf16.msra.mxu0 %v2093_v28  ;;  %v2115_v28 = vld [vmem:[%s2826_s4 + $0xc0] sm:$0xff] }
 0x3ae   :  { %1444 = vmatpush.bf16.msra.mxu2 %v2115_v28 }
 0x3bc   :  { %964 = vmatmul.bf16.gmra.mxu2 %v2298_v29  ;;  %v2092_v29 = vld [vmem:[%s2827_s3 + $0x88] sm:$0xff] }
 0x3bd   :  { %1194 = vmatpush.bf16.msra.mxu0 %v2092_v29 }
 0x3cc   :  { %969 = vmatmul.bf16.gmra.mxu2 %v2316_v34  ;;  %v2091_v34 = vld [vmem:[%s2827_s3 + $0x80] sm:$0xff] }
 0x3cd   :  { %1195 = vmatpush.bf16.msra.mxu0 %v2091_v34 }
 0x3dc   :  { %974 = vmatmul.bf16.gmra.mxu2 %v2343_v42 }
 0x3ec   :  { %979 = vmatmul.bf16.gmra.mxu2 %v2365_v48 }
 0x3ff   :  { %v945_v21 = vpop.f32.mrf.mxu2 }
 0x400   :  { %v985_v35 = vmul.f32 %v945_v21, %v2369_v49 }
 0x407   :  { %v947_v42 = vpop.f32.mrf.mxu2 }
 0x408   :  { %v986_v55 = vmul.f32 %v947_v42, %v2371_v51 }
 0x40a   :  { %v1001_v7 = vpack.c.bf16 %v986_v55, %v985_v35  ;;  %v1105_v35 = vpop.f32.mrf.mxu3 }
 0x40c   :  { %1196 = vmatmul.bf16.vlgmr.msra.gmra.mxu0 %v1001_v7 }
 0x40f   :  { %v950_v9 = vpop.f32.mrf.mxu2 }
 0x410   :  { %v987_v15 = vmul.f32 %v950_v9, %v2376_v56 }
 0x412   :  { %v1107_v55 = vpop.f32.mrf.mxu3 }
 0x417   :  { %v952_v14 = vpop.f32.mrf.mxu2 }
 0x418   :  { %v988_v16 = vmul.f32 %v952_v14, %v2378_v58  ;;  %v2660_v14 = vld [vmem:[%s2828_s5 + $0x2] ss:$0 sm:$0xff] }
 0x41a   :  { %v1002_v18 = vpack.c.bf16 %v988_v16, %v987_v15 }
 0x41c   :  { %1201 = vmatmul.bf16.gmra.mxu0 %v1002_v18 }
 0x41f   :  { %v955_v8 = vpop.f32.mrf.mxu2 }
 0x420   :  { %v989_v48 = vmul.f32 %v955_v8, %v2383_v63  ;;  %v1110_v8 = vpop.f32.mrf.mxu3 }
 0x427   :  { %v957_v22 = vpop.f32.mrf.mxu2 }
 0x428   :  { %v990_v10 = vmul.f32 %v957_v22, %v2385_v2 }
 0x42a   :  { %v1003_v37 = vpack.c.bf16 %v990_v10, %v989_v48 }
 0x42c   :  { %1206 = vmatmul.bf16.gmra.mxu0 %v1003_v37 }
 0x42f   :  { %v960_v54 = vpop.f32.mrf.mxu2 }
 0x430   :  { %v991_v24 = vmul.f32 %v960_v54, %v2390_v12 }
 0x437   :  { %v962_v11 = vpop.f32.mrf.mxu2 }
 0x438   :  { %v992_v25 = vmul.f32 %v962_v11, %v2392_v13  ;;  %v1112_v11 = vpop.f32.mrf.mxu3 }
 0x43a   :  { %v1004_v5 = vpack.c.bf16 %v992_v25, %v991_v24 }
 0x43c   :  { %1211 = vmatmul.bf16.gmra.mxu0 %v1004_v5 }
 0x43f   :  { %v965_v31 = vpop.f32.mrf.mxu2 }
 0x440   :  { %v993_v33 = vmul.f32 %v965_v31, %v2399_v20 }
 0x447   :  { %v967_v32 = vpop.f32.mrf.mxu2 }
 0x448   :  { %v994_v3 = vmul.f32 %v967_v32, %v2397_v19 }
 0x44a   :  { %v1005_v36 = vpack.c.bf16 %v994_v3, %v993_v33 }
 0x44c   :  { %1216 = vmatmul.bf16.gmra.mxu0 %v1005_v36  ;;  %v1115_v36 = vpop.f32.mrf.mxu3 }
 0x44f   :  { %v970_v0 = vpop.f32.mrf.mxu2 }
 0x450   :  { %v995_v41 = vmul.f32 %v970_v0, %v2404_v27 }
 0x457   :  { %v972_v40 = vpop.f32.mrf.mxu2 }
 0x458   :  { %v996_v43 = vmul.f32 %v972_v40, %v2406_v30 }
 0x45a   :  { %v1006_v45 = vpack.c.bf16 %v996_v43, %v995_v41  ;;  %v1117_v43 = vpop.f32.mrf.mxu3 }
 0x45c   :  { %1221 = vmatmul.bf16.gmra.mxu0 %v1006_v45 }
 0x45f   :  { %v975_v47 = vpop.f32.mrf.mxu2 }
 0x460   :  { %v997_v61 = vmul.f32 %v975_v47, %v2420_v38 }
 0x467   :  { %v977_v60 = vpop.f32.mrf.mxu2 }
 0x468   :  { %v998_v62 = vmul.f32 %v977_v60, %v2425_v39 }
 0x46a   :  { %v1007_v6 = vpack.c.bf16 %v998_v62, %v997_v61  ;;  %v1120_v62 = vpop.f32.mrf.mxu3 }
 0x46c   :  { %1226 = vmatmul.bf16.gmra.mxu0 %v1007_v6 }
 0x46f   :  { %v980_v17 = vpop.f32.mrf.mxu2 }
 0x470   :  { %v999_v34 = vmul.f32 %v980_v17, %v2437_v53 }
 0x472   :  { %v1122_v23 = vpop.f32.mrf.mxu3 }
 0x477   :  { %v982_v29 = vpop.f32.mrf.mxu2 }
 0x478   :  { %v1000_v21 = vmul.f32 %v982_v29, %v2435_v52 }
 0x47a   :  { %v1008_v42 = vpack.c.bf16 %v1000_v21, %v999_v34 }
 0x47c   :  { %1231 = vmatmul.bf16.gmra.mxu0 %v1008_v42  ;;  %v1125_v42 = vpop.f32.mrf.mxu3 }
 0x489   :  { %v1197_v7 = vpop.f32.mrf.mxu0 }
 0x48a   :  { %v1198_v9 = vadd.f32 %v1197_v7, %v1100_v50 }
 0x48c   :  { %v1242_v16 = vadd.f32 %v2660_v14, %v1198_v9 }
 0x48e   :  { %v1258_v48 = vmax.f32 %v1242_v16, 0.0 }
 0x491   :  { %v1199_v15 = vpop.f32.mrf.mxu0 }
 0x492   :  { %v1200_v18 = vadd.f32 %v1199_v15, %v1102_v26 }
 0x494   :  { %v1243_v22 = vadd.f32 %v2660_v14, %v1200_v18 }
 0x496   :  { %v1259_v10 = vmax.f32 %v1243_v22, 0.0 }
 0x498   :  { %v2664_v37 = vpack.c.bf16 %v1259_v10, %v1258_v48 }
 0x499   :  { %v1202_v54 = vpop.f32.mrf.mxu0 }
 0x49a   :  { %1445 = vmatmul.bf16.vlgmr.msra.gmra.mxu2 %v2664_v37  ;;  %v1203_v24 = vadd.f32 %v1202_v54, %v1105_v35 }
 0x49c   :  { %v1244_v5 = vadd.f32 %v2660_v14, %v1203_v24 }
 0x49e   :  { %v1260_v33 = vmax.f32 %v1244_v5, 0.0 }
 0x4a1   :  { %v1204_v25 = vpop.f32.mrf.mxu0 }
 0x4a2   :  { %v1205_v31 = vadd.f32 %v1204_v25, %v1107_v55 }
 0x4a4   :  { %v1245_v32 = vadd.f32 %v2660_v14, %v1205_v31 }
 0x4a6   :  { %v1261_v3 = vmax.f32 %v1245_v32, 0.0 }
 0x4a8   :  { %v2669_v0 = vpack.c.bf16 %v1261_v3, %v1260_v33 }
 0x4a9   :  { %v1207_v40 = vpop.f32.mrf.mxu0 }
 0x4aa   :  { %1450 = vmatmul.bf16.gmra.mxu2 %v2669_v0  ;;  %v1208_v41 = vadd.f32 %v1207_v40, %v1110_v8  ;;  %v1127_v8 = vpop.f32.mrf.mxu3 }
 0x4ac   :  { %v1246_v45 = vadd.f32 %v2660_v14, %v1208_v41 }
 0x4ae   :  { %v1262_v57 = vmax.f32 %v1246_v45, 0.0 }
 0x4b1   :  { %v1209_v44 = vpop.f32.mrf.mxu0 }
 0x4b2   :  { %v1210_v46 = vadd.f32 %v1209_v44, %v1112_v11  ;;  %v1130_v24 = vpop.f32.mrf.mxu3 }
 0x4b4   :  { %v1247_v47 = vadd.f32 %v2660_v14, %v1210_v46 }
 0x4b6   :  { %v1263_v59 = vmax.f32 %v1247_v47, 0.0 }
 0x4b8   :  { %v2674_v60 = vpack.c.bf16 %v1263_v59, %v1262_v57 }
 0x4b9   :  { %v1212_v61 = vpop.f32.mrf.mxu0 }
 0x4ba   :  { %1455 = vmatmul.bf16.gmra.mxu2 %v2674_v60  ;;  %v1213_v1 = vadd.f32 %v1212_v61, %v1115_v36  ;;  %v1132_v3 = vpop.f32.mrf.mxu3 }
 0x4bc   :  { %v1248_v50 = vadd.f32 %v2660_v14, %v1213_v1 }
 0x4be   :  { %v1264_v26 = vmax.f32 %v1248_v50, 0.0 }
 0x4c1   :  { %v1214_v6 = vpop.f32.mrf.mxu0 }
 0x4c2   :  { %v1215_v4 = vadd.f32 %v1214_v6, %v1117_v43  ;;  %v1135_v47 = vpop.f32.mrf.mxu3 }
 0x4c4   :  { %v1249_v17 = vadd.f32 %v2660_v14, %v1215_v4 }
 0x4c6   :  { %v1265_v28 = vmax.f32 %v1249_v17, 0.0 }
 0x4c8   :  { %v1277_v29 = vpack.c.bf16 %v1265_v28, %v1264_v26  ;;  %v2131_v28 = vld [vmem:[%s2825_s0] sm:$0xff] }
 0x4c9   :  { %v1217_v34 = vpop.f32.mrf.mxu0 }
 0x4ca   :  { %1460 = vmatmul.bf16.gmra.mxu2 %v1277_v29  ;;  %v1218_v21 = vadd.f32 %v1217_v34, %v1120_v62  ;;  %v1137_v62 = vpop.f32.mrf.mxu3  ;;  %v2113_v34 = vld [vmem:[%s2827_s3 + $0xf0] sm:$0xff] }
 0x4cc   :  { %v1250_v55 = vadd.f32 %v2660_v14, %v1218_v21  ;;  %v2136_v21 = vld [vmem:[%s2825_s0 + $0x28] sm:$0xff] }
 0x4ce   :  { %v1266_v15 = vmax.f32 %v1250_v55, 0.0  ;;  %v2110_v55 = vld [vmem:[%s2827_s3 + $0xd8] sm:$0xff] }
 0x4d1   :  { %v1219_v35 = vpop.f32.mrf.mxu0 }
 0x4d2   :  { %v1220_v7 = vadd.f32 %v1219_v35, %v1122_v23  ;;  %v2111_v35 = vld [vmem:[%s2827_s3 + $0xe0] sm:$0xff] }
 0x4d4   :  { %v1251_v9 = vadd.f32 %v2660_v14, %v1220_v7  ;;  %v2109_v7 = vld [vmem:[%s2827_s3 + $0xd0] sm:$0xff] }
 0x4d6   :  { %v1267_v16 = vmax.f32 %v1251_v9, 0.0  ;;  %v2108_v9 = vld [vmem:[%s2827_s3 + $0xc8] sm:$0xff] }
 0x4d8   :  { %v1278_v18 = vpack.c.bf16 %v1267_v16, %v1266_v15  ;;  %v2137_v15 = vld [vmem:[%s2825_s0 + $0x30] sm:$0xff]  ;;  %v2107_v16 = vld [vmem:[%s2827_s3 + $0xc0] sm:$0xff] }
 0x4d9   :  { %v1222_v22 = vpop.f32.mrf.mxu0 }
 0x4da   :  { %1465 = vmatmul.bf16.gmra.mxu2 %v1278_v18  ;;  %v1223_v48 = vadd.f32 %v1222_v22, %v1125_v42  ;;  %v2112_v42 = vld [vmem:[%s2827_s3 + $0xe8] sm:$0xff] }
 0x4dc   :  { %v1252_v54 = vadd.f32 %v2660_v14, %v1223_v48 }
 0x4de   :  { %v1268_v5 = vmax.f32 %v1252_v54, 0.0 }
 0x4e1   :  { %v1224_v10 = vpop.f32.mrf.mxu0 }
 0x4e2   :  { %v1225_v11 = vadd.f32 %v1224_v10, %v1127_v8 }
 0x4e4   :  { %v1253_v25 = vadd.f32 %v2660_v14, %v1225_v11 }
 0x4e6   :  { %v1269_v31 = vmax.f32 %v1253_v25, 0.0 }
 0x4e8   :  { %v1279_v32 = vpack.c.bf16 %v1269_v31, %v1268_v5 }
 0x4e9   :  { %v1227_v33 = vpop.f32.mrf.mxu0 }
 0x4ea   :  { %1470 = vmatmul.bf16.gmra.mxu2 %v1279_v32  ;;  %v1228_v36 = vadd.f32 %v1227_v33, %v1130_v24 }
 0x4ec   :  { %v1254_v41 = vadd.f32 %v2660_v14, %v1228_v36 }
 0x4ee   :  { %v1270_v45 = vmax.f32 %v1254_v41, 0.0 }
 0x4f1   :  { %v1229_v40 = vpop.f32.mrf.mxu0 }
 0x4f2   :  { %v1230_v43 = vadd.f32 %v1229_v40, %v1132_v3 }
 0x4f4   :  { %v1255_v44 = vadd.f32 %v2660_v14, %v1230_v43 }
 0x4f6   :  { %v1271_v46 = vmax.f32 %v1255_v44, 0.0 }
 0x4f8   :  { %v1280_v57 = vpack.c.bf16 %v1271_v46, %v1270_v45 }
 0x4f9   :  { %v1232_v59 = vpop.f32.mrf.mxu0 }
 0x4fa   :  { %1475 = vmatmul.bf16.gmra.mxu2 %v1280_v57  ;;  %v1233_v61 = vadd.f32 %v1232_v59, %v1135_v47 }
 0x4fc   :  { %v1256_v6 = vadd.f32 %v2660_v14, %v1233_v61 }
 0x4fe   :  { %v1272_v17 = vmax.f32 %v1256_v6, 0.0 }
 0x501   :  { %v1234_v1 = vpop.f32.mrf.mxu0 }
 0x502   :  { %v1235_v50 = vadd.f32 %v1234_v1, %v1137_v62 }
 0x504   :  { %v1257_v4 = vadd.f32 %v2660_v14, %v1235_v50  ;;  %v2132_v14 = vld [vmem:[%s2825_s0 + $0x8] sm:$0xff] }
 0x506   :  { %v1273_v23 = vmax.f32 %v1257_v4, 0.0 }
 0x508   :  { %v1281_v26 = vpack.c.bf16 %v1273_v23, %v1272_v17 }
 0x50a   :  { %1282 = vmatpush.bf16.msra.mxu1 %v1281_v26  ;;  %1480 = vmatmul.bf16.gmra.mxu2 %v1281_v26  ;;  %v2757_v26 = vld [vmem:[%s2828_s5 + $0x3] ss:$0 sm:$0xff] }
 0x50e   :  { %1283 = vmatpush.bf16.msra.mxu1 %v1280_v57 }
 0x512   :  { %1284 = vmatpush.bf16.msra.mxu1 %v1279_v32 }
 0x516   :  { %1285 = vmatpush.bf16.msra.mxu1 %v1278_v18  ;;  %v2138_v18 = vld [vmem:[%s2825_s0 + $0x38] sm:$0xff] }
 0x51a   :  { %1286 = vmatpush.bf16.msra.mxu1 %v1277_v29  ;;  %v2133_v29 = vld [vmem:[%s2825_s0 + $0x10] sm:$0xff] }
 0x51e   :  { %1287 = vmatpush.bf16.msra.mxu1 %v2674_v60  ;;  %v2114_v60 = vld [vmem:[%s2827_s3 + $0xf8] sm:$0xff] }
 0x51f   :  { %1534 = vmatpush.bf16.msra.mxu3 %v2114_v60 }
 0x522   :  { %1288 = vmatpush.bf16.msra.mxu1 %v2669_v0  ;;  %v2134_v0 = vld [vmem:[%s2825_s0 + $0x18] sm:$0xff] }
 0x523   :  { %1535 = vmatpush.bf16.msra.mxu3 %v2113_v34 }
 0x526   :  { %1289 = vmatpush.bf16.msra.mxu1 %v2664_v37  ;;  %v2135_v37 = vld [vmem:[%s2825_s0 + $0x20] sm:$0xff] }
 0x527   :  { %1536 = vmatpush.bf16.msra.mxu3 %v2112_v42 }
 0x529   :  { %1290 = vmatmul.bf16.vlgmr.msra.gmra.mxu1 %v2131_v28 }
 0x52b   :  { %1537 = vmatpush.bf16.msra.mxu3 %v2111_v35 }
 0x52f   :  { %1538 = vmatpush.bf16.msra.mxu3 %v2110_v55 }
 0x533   :  { %1539 = vmatpush.bf16.msra.mxu3 %v2109_v7 }
 0x537   :  { %1540 = vmatpush.bf16.msra.mxu3 %v2108_v9 }
 0x539   :  { %1295 = vmatmul.bf16.gmra.mxu1 %v2132_v14 }
 0x53b   :  { %1541 = vmatpush.bf16.msra.mxu3 %v2107_v16 }
 0x549   :  { %1300 = vmatmul.bf16.gmra.mxu1 %v2133_v29 }
 0x559   :  { %1305 = vmatmul.bf16.gmra.mxu1 %v2134_v0 }
 0x569   :  { %1310 = vmatmul.bf16.gmra.mxu1 %v2135_v37 }
 0x579   :  { %1315 = vmatmul.bf16.gmra.mxu1 %v2136_v21 }
 0x589   :  { %1320 = vmatmul.bf16.gmra.mxu1 %v2137_v15 }
 0x599   :  { %1325 = vmatmul.bf16.gmra.mxu1 %v2138_v18 }
 0x5a6   :  { %v1291_v8 = vpop.f32.mrf.mxu1 }
 0x5a7   :  { %v1331_v48 = vmul.f32 %v1291_v8, %v2369_v49 }
 0x5ae   :  { %v1293_v22 = vpop.f32.mrf.mxu1 }
 0x5af   :  { %v1332_v10 = vmul.f32 %v1293_v22, %v2371_v51 }
 0x5b1   :  { %v1347_v54 = vpack.c.bf16 %v1332_v10, %v1331_v48 }
 0x5b3   :  { %1542 = vmatmul.bf16.vlgmr.msra.gmra.mxu3 %v1347_v54 }
 0x5b6   :  { %v1296_v11 = vpop.f32.mrf.mxu1 }
 0x5b7   :  { %v1333_v25 = vmul.f32 %v1296_v11, %v2376_v56 }
 0x5be   :  { %v1298_v24 = vpop.f32.mrf.mxu1 }
 0x5bf   :  { %v1334_v5 = vmul.f32 %v1298_v24, %v2378_v58 }
 0x5c1   :  { %v1348_v31 = vpack.c.bf16 %v1334_v5, %v1333_v25 }
 0x5c3   :  { %1547 = vmatmul.bf16.gmra.mxu3 %v1348_v31 }
 0x5c6   :  { %v1301_v32 = vpop.f32.mrf.mxu1 }
 0x5c7   :  { %v1335_v3 = vmul.f32 %v1301_v32, %v2383_v63 }
 0x5ce   :  { %v1303_v33 = vpop.f32.mrf.mxu1 }
 0x5cf   :  { %v1336_v36 = vmul.f32 %v1303_v33, %v2385_v2 }
 0x5d1   :  { %v1349_v40 = vpack.c.bf16 %v1336_v36, %v1335_v3 }
 0x5d3   :  { %1552 = vmatmul.bf16.gmra.mxu3 %v1349_v40 }
 0x5d6   :  { %v1306_v49 = vpop.f32.mrf.mxu1 }
 0x5d7   :  { %v1337_v41 = vmul.f32 %v1306_v49, %v2390_v12 }
 0x5de   :  { %v1308_v51 = vpop.f32.mrf.mxu1 }
 0x5df   :  { %v1338_v43 = vmul.f32 %v1308_v51, %v2392_v13 }
 0x5e1   :  { %v1350_v44 = vpack.c.bf16 %v1338_v43, %v1337_v41 }
 0x5e3   :  { %1557 = vmatmul.bf16.gmra.mxu3 %v1350_v44 }
 0x5e6   :  { %v1311_v56 = vpop.f32.mrf.mxu1 }
 0x5e7   :  { %v1339_v45 = vmul.f32 %v1311_v56, %v2399_v20 }
 0x5ee   :  { %v1313_v58 = vpop.f32.mrf.mxu1 }
 0x5ef   :  { %v1340_v46 = vmul.f32 %v1313_v58, %v2397_v19  ;;  %v1446_v19 = vpop.f32.mrf.mxu2 }
 0x5f1   :  { %v1351_v47 = vpack.c.bf16 %v1340_v46, %v1339_v45 }
 0x5f3   :  { %1562 = vmatmul.bf16.gmra.mxu3 %v1351_v47 }
 0x5f6   :  { %v1316_v63 = vpop.f32.mrf.mxu1 }
 0x5f7   :  { %v1341_v57 = vmul.f32 %v1316_v63, %v2404_v27  ;;  %v1448_v23 = vpop.f32.mrf.mxu2 }
 0x5fe   :  { %v1318_v2 = vpop.f32.mrf.mxu1 }
 0x5ff   :  { %v1342_v59 = vmul.f32 %v1318_v2, %v2406_v30  ;;  %v1451_v30 = vpop.f32.mrf.mxu2 }
 0x601   :  { %v1352_v61 = vpack.c.bf16 %v1342_v59, %v1341_v57 }
 0x603   :  { %1567 = vmatmul.bf16.gmra.mxu3 %v1352_v61 }
 0x606   :  { %v1321_v12 = vpop.f32.mrf.mxu1 }
 0x607   :  { %v1343_v62 = vmul.f32 %v1321_v12, %v2420_v38  ;;  %v1453_v38 = vpop.f32.mrf.mxu2 }
 0x60e   :  { %v1323_v13 = vpop.f32.mrf.mxu1 }
 0x60f   :  { %v1344_v1 = vmul.f32 %v1323_v13, %v2425_v39  ;;  %v1456_v29 = vpop.f32.mrf.mxu2 }
 0x611   :  { %v1353_v6 = vpack.c.bf16 %v1344_v1, %v1343_v62 }
 0x613   :  { %1572 = vmatmul.bf16.gmra.mxu3 %v1353_v6 }
 0x616   :  { %v1326_v20 = vpop.f32.mrf.mxu1 }
 0x617   :  { %v1345_v4 = vmul.f32 %v1326_v20, %v2437_v53  ;;  %v1458_v21 = vpop.f32.mrf.mxu2 }
 0x61e   :  { %v1328_v50 = vpop.f32.mrf.mxu1 }
 0x61f   :  { %v1346_v17 = vmul.f32 %v1328_v50, %v2435_v52  ;;  %v1461_v7 = vpop.f32.mrf.mxu2 }
 0x621   :  { %v1354_v27 = vpack.c.bf16 %v1346_v17, %v1345_v4 }
 0x623   :  { %1577 = vmatmul.bf16.gmra.mxu3 %v1354_v27 }
 0x627   :  { %v1463_v18 = vpop.f32.mrf.mxu2 }
 0x62f   :  { %v1466_v11 = vpop.f32.mrf.mxu2 }
 0x636   :  { %v1543_v39 = vpop.f32.mrf.mxu3 }
 0x637   :  { %v1544_v28 = vadd.f32 %v1543_v39, %v1446_v19  ;;  %v1468_v32 = vpop.f32.mrf.mxu2 }
 0x639   :  { %v1588_v14 = vadd.f32 %v2757_v26, %v1544_v28 }
 0x63b   :  { %1604 = vst [vmem:[%s2829_s6] sm:$0xff] %v1588_v14 }
 0x63e   :  { %v1545_v53 = vpop.f32.mrf.mxu3 }
 0x63f   :  { %v1546_v52 = vadd.f32 %v1545_v53, %v1448_v23  ;;  %v1471_v40 = vpop.f32.mrf.mxu2 }
 0x641   :  { %v1589_v0 = vadd.f32 %v2757_v26, %v1546_v52 }
 0x643   :  { %1605 = vst [vmem:[%s2829_s6 + $0x8] sm:$0xff] %v1589_v0 }
 0x646   :  { %v1548_v37 = vpop.f32.mrf.mxu3 }
 0x647   :  { %v1549_v60 = vadd.f32 %v1548_v37, %v1451_v30  ;;  %v1473_v43 = vpop.f32.mrf.mxu2 }
 0x649   :  { %v1590_v34 = vadd.f32 %v2757_v26, %v1549_v60 }
 0x64b   :  { %1606 = vst [vmem:[%s2829_s6 + $0x10] sm:$0xff] %v1590_v34 }
 0x64e   :  { %v1550_v42 = vpop.f32.mrf.mxu3 }
 0x64f   :  { %v1551_v35 = vadd.f32 %v1550_v42, %v1453_v38  ;;  %v1476_v47 = vpop.f32.mrf.mxu2 }
 0x651   :  { %v1591_v55 = vadd.f32 %v2757_v26, %v1551_v35 }
 0x653   :  { %1607 = vst [vmem:[%s2829_s6 + $0x18] sm:$0xff] %v1591_v55 }
 0x656   :  { %v1553_v9 = vpop.f32.mrf.mxu3 }
 0x657   :  { %v1554_v15 = vadd.f32 %v1553_v9, %v1456_v29  ;;  %v1478_v61 = vpop.f32.mrf.mxu2 }
 0x659   :  { %v1592_v16 = vadd.f32 %v2757_v26, %v1554_v15 }
 0x65b   :  { %1608 = vst [vmem:[%s2829_s6 + $0x20] sm:$0xff] %v1592_v16 }
 0x65e   :  { %v1555_v8 = vpop.f32.mrf.mxu3 }
 0x65f   :  { %v1556_v22 = vadd.f32 %v1555_v8, %v1458_v21  ;;  %v1481_v1 = vpop.f32.mrf.mxu2 }
 0x661   :  { %v1593_v48 = vadd.f32 %v2757_v26, %v1556_v22 }
 0x663   :  { %1609 = vst [vmem:[%s2829_s6 + $0x28] sm:$0xff] %v1593_v48 }
 0x666   :  { %v1558_v10 = vpop.f32.mrf.mxu3 }
 0x667   :  { %v1559_v54 = vadd.f32 %v1558_v10, %v1461_v7  ;;  %v1483_v50 = vpop.f32.mrf.mxu2 }
 0x669   :  { %v1594_v24 = vadd.f32 %v2757_v26, %v1559_v54 }
 0x66b   :  { %1610 = vst [vmem:[%s2829_s6 + $0x30] sm:$0xff] %v1594_v24 }
 0x66e   :  { %v1560_v25 = vpop.f32.mrf.mxu3 }
 0x66f   :  { %v1561_v5 = vadd.f32 %v1560_v25, %v1463_v18 }
 0x671   :  { %v1595_v31 = vadd.f32 %v2757_v26, %v1561_v5 }
 0x673   :  { %1611 = vst [vmem:[%s2829_s6 + $0x38] sm:$0xff] %v1595_v31 }
 0x676   :  { %v1563_v33 = vpop.f32.mrf.mxu3 }
 0x677   :  { %v1564_v3 = vadd.f32 %v1563_v33, %v1466_v11 }
 0x679   :  { %v1596_v36 = vadd.f32 %v2757_v26, %v1564_v3 }
 0x67b   :  { %1612 = vst [vmem:[%s2829_s6 + $0x40] sm:$0xff] %v1596_v36 }
 0x67e   :  { %v1565_v49 = vpop.f32.mrf.mxu3 }
 0x67f   :  { %v1566_v51 = vadd.f32 %v1565_v49, %v1468_v32 }
 0x681   :  { %v1597_v41 = vadd.f32 %v2757_v26, %v1566_v51 }
 0x683   :  { %1613 = vst [vmem:[%s2829_s6 + $0x48] sm:$0xff] %v1597_v41 }
 0x686   :  { %v1568_v44 = vpop.f32.mrf.mxu3 }
 0x687   :  { %v1569_v56 = vadd.f32 %v1568_v44, %v1471_v40 }
 0x689   :  { %v1598_v58 = vadd.f32 %v2757_v26, %v1569_v56 }
 0x68b   :  { %1614 = vst [vmem:[%s2829_s6 + $0x50] sm:$0xff] %v1598_v58 }
 0x68e   :  { %v1570_v45 = vpop.f32.mrf.mxu3 }
 0x68f   :  { %v1571_v46 = vadd.f32 %v1570_v45, %v1473_v43 }
 0x691   :  { %v1599_v63 = vadd.f32 %v2757_v26, %v1571_v46 }
 0x693   :  { %1615 = vst [vmem:[%s2829_s6 + $0x58] sm:$0xff] %v1599_v63 }
 0x696   :  { %v1573_v2 = vpop.f32.mrf.mxu3 }
 0x697   :  { %v1574_v57 = vadd.f32 %v1573_v2, %v1476_v47 }
 0x699   :  { %v1600_v59 = vadd.f32 %v2757_v26, %v1574_v57 }
 0x69b   :  { %1616 = vst [vmem:[%s2829_s6 + $0x60] sm:$0xff] %v1600_v59 }
 0x69e   :  { %v1575_v12 = vpop.f32.mrf.mxu3 }
 0x69f   :  { %v1576_v13 = vadd.f32 %v1575_v12, %v1478_v61 }
 0x6a1   :  { %v1601_v62 = vadd.f32 %v2757_v26, %v1576_v13 }
 0x6a3   :  { %1617 = vst [vmem:[%s2829_s6 + $0x68] sm:$0xff] %v1601_v62 }
 0x6a6   :  { %v1578_v6 = vpop.f32.mrf.mxu3 }
 0x6a7   :  { %v1579_v20 = vadd.f32 %v1578_v6, %v1481_v1 }
 0x6a9   :  { %v1602_v19 = vadd.f32 %v2757_v26, %v1579_v20 }
 0x6ab   :  { %1618 = vst [vmem:[%s2829_s6 + $0x70] sm:$0xff] %v1602_v19 }
 0x6ae   :  { %v1580_v4 = vpop.f32.mrf.mxu3 }
 0x6af   :  { %v1581_v17 = vadd.f32 %v1580_v4, %v1483_v50 }
 0x6b1   :  { %v1603_v27 = vadd.f32 %v2757_v26, %v1581_v17 }
 0x6b3   :  { %1619 = vst [vmem:[%s2829_s6 + $0x78] sm:$0xff] %v1603_v27 }

</bundles_post_ra>
